<compile_context>
chip_gen: v7x
topology: tpu7x:2x2x1
jax: 0.10.0
libtpu: 0.0.40
codegen_flags: <defaults>
</compile_context>

<pallas_src>
import math

import jax
import jax.numpy as jnp
from jax.experimental import pallas as pl
from jax.experimental.pallas import tpu as pltpu


# ---------------- hyperparameters (hp.*) -----------------
TOKEN_NUM = 8          # hp.token_num (T)
TOKEN_EMB_SIZE = 32    # hp.token_emb_size (E)
NUM_HEADS = 4          # hp.num_heads (H)

D_Q = TOKEN_EMB_SIZE // 2            # query_dim (16)
D_K = TOKEN_EMB_SIZE // NUM_HEADS    # key_dim == raw embed feature dim (8)
NUM_UNITS = TOKEN_EMB_SIZE           # U (32)
HEAD_DIM = NUM_UNITS // NUM_HEADS    # Dh (8)
HT = NUM_HEADS * TOKEN_NUM           # scores per batch row (32)


def gqdl_kernel(x_ref, wqkt_ref, hsum_ref, vblk_ref, o_ref):
    """One batch tile of the fused GQDL forward (natural row-major layouts).

    x_ref    : [tile, D_Q]    input rows
    wqkt_ref : [D_Q, HT]      (K_blk @ W_query / sqrt(d_k))^T  -- folded score projection
    hsum_ref : [HT, HT]       1 where columns belong to the same head (sum+broadcast)
    vblk_ref : [HT, U]        block-diagonal per-head value projection
    o_ref    : [tile, U]      output rows
    """
    x = x_ref[...].astype(jnp.float32)

    # All-head scores in one MXU push: st[n, h*T+t] = q_h(n) . k_h(t) / sqrt(d_k)
    st = jnp.dot(x, wqkt_ref[...], preferred_element_type=jnp.float32)     # [tile, HT]

    # Per-head softmax. Subtracting the per-row max (>= every per-head max) is exact
    # by shift invariance and keeps all exp arguments <= 0.
    st = st - jnp.max(st, axis=-1, keepdims=True)
    p = jnp.exp(st)

    # Per-head denominators, summed and broadcast back to each column via the MXU.
    denom = jnp.dot(p, hsum_ref[...], preferred_element_type=jnp.float32)  # [tile, HT]
    p = p * pl.reciprocal(denom, approx=False)                             # exact EUP recip

    # Block-diagonal value projection fuses per-head attention + concat: [tile, U].
    out = jnp.dot(p, vblk_ref[...], preferred_element_type=jnp.float32)
    o_ref[...] = out.astype(o_ref.dtype)


def _round_up(n, m):
    return ((n + m - 1) // m) * m


def _default_tile_n():
    """Rows per grid step. v5e: smaller tiles already saturate its slower HBM and
    single vst slot; v6e/v7x: 4096 keeps double-buffered tiles well under the
    32 MiB scoped-VMEM limit (raise to 8192 together with vmem_limit if desired)."""
    try:
        kind = jax.devices()[0].device_kind.lower()
    except Exception:
        return 4096
    if "v5 lite" in kind or "v5e" in kind or "v5lite" in kind:
        return 2048
    return 4096


def _block_diag_heads(m, num_heads):
    """[T, U] -> [H*T, U] block-diagonal: head h's [T, Dh] slab on the diagonal."""
    t, u = m.shape
    dh = u // num_heads
    blk = jnp.zeros((num_heads * t, u), jnp.float32)
    for h in range(num_heads):
        blk = blk.at[h * t:(h + 1) * t, h * dh:(h + 1) * dh].set(
            m[:, h * dh:(h + 1) * dh].astype(jnp.float32))
    return blk


def gqdl_forward(inputs, embed, w_query, w_key, w_value, *,
                 tile_n=None, stream_dtype=None):
    """inputs: [N, E//2] -> [N, 1, E] (matches the PyTorch module output)."""
    n = inputs.shape[0]
    out_dtype = jnp.dtype(stream_dtype) if stream_dtype is not None else inputs.dtype
    if tile_n is None:
        tile_n = _default_tile_n()
    # Keep small batches cheap; tile_n must stay a multiple of 8 (sublane granule).
    tile_n = int(min(tile_n, _round_up(max(n, 1), 512)))
    padded_n = _round_up(max(n, 1), tile_n)

    # ---- batch-independent precompute (hoisted out of the kernel, all tiny) ----
    keys = jnp.tanh(embed).astype(jnp.float32)                              # [T, D_K]
    k_blk = _block_diag_heads(keys @ w_key.astype(jnp.float32).T, NUM_HEADS)   # [HT, U]
    v_blk = _block_diag_heads(keys @ w_value.astype(jnp.float32).T, NUM_HEADS) # [HT, U]
    # Fold W_query (and the 1/sqrt(d_k) scale) into the score projection.
    wqk_t = ((k_blk @ w_query.astype(jnp.float32)) / math.sqrt(D_K)).T      # [D_Q, HT]
    head_id = jnp.arange(HT) // TOKEN_NUM
    hsum = (head_id[:, None] == head_id[None, :]).astype(jnp.float32)       # [HT, HT]

    x = inputs.astype(out_dtype)
    if padded_n != n:
        # Zero rows give a uniform softmax and finite outputs; they are sliced off.
        x = jnp.pad(x, ((0, padded_n - n), (0, 0)))

    out = pl.pallas_call(
        gqdl_kernel,
        out_shape=jax.ShapeDtypeStruct((padded_n, NUM_UNITS), out_dtype),
        grid=(padded_n // tile_n,),
        in_specs=[
            pl.BlockSpec((tile_n, D_Q), lambda i: (i, 0)),        # streamed input rows
            pl.BlockSpec((D_Q, HT), lambda i: (0, 0)),            # folded Wqk^T (const)
            pl.BlockSpec((HT, HT), lambda i: (0, 0)),             # head-sum matrix (const)
            pl.BlockSpec((HT, NUM_UNITS), lambda i: (0, 0)),      # V_blk (const)
        ],
        out_specs=pl.BlockSpec((tile_n, NUM_UNITS), lambda i: (i, 0)),
        compiler_params=pltpu.CompilerParams(
            dimension_semantics=("parallel",),        # shards grid steps across TCs
            vmem_limit_bytes=32 * 1024 * 1024,        # conservative; fine on v7x's 64 MiB
        ),
    )(x, wqk_t, hsum, v_blk)

    if padded_n != n:
        out = out[:n]
    return out.reshape(n, 1, NUM_UNITS)


def reference_forward(inputs, embed, w_query, w_key, w_value):
    """Pure-JAX reference mirroring the PyTorch code, for verification."""
    n = inputs.shape[0]
    query = inputs[:, None, :]                                  # [N,1,D_Q]
    keys = jnp.tanh(embed)[None].repeat(n, axis=0)              # [N,T,D_K]
    q = query @ w_query.T                                       # [N,1,U]
    k = keys @ w_key.T                                          # [N,T,U]
    v = keys @ w_value.T                                        # [N,T,U]
    qs = jnp.stack(jnp.split(q, NUM_HEADS, axis=2), axis=0)     # [H,N,1,Dh]
    ks = jnp.stack(jnp.split(k, NUM_HEADS, axis=2), axis=0)
    vs = jnp.stack(jnp.split(v, NUM_HEADS, axis=2), axis=0)
    scores = qs @ jnp.swapaxes(ks, 2, 3)                        # [H,N,1,T]
    scores = scores / (D_K ** 0.5)
    scores = jax.nn.softmax(scores, axis=3)
    out = scores @ vs                                           # [H,N,1,Dh]
    out = jnp.concatenate(jnp.split(out, NUM_HEADS, axis=0), axis=3)[0]  # [N,1,U]
    return out


if __name__ == "__main__":
    key = jax.random.PRNGKey(0)
    k_in, k_emb, k_wq, k_wk, k_wv = jax.random.split(key, 5)

    N = 2
    inputs = jax.random.normal(k_in, (N, D_Q), dtype=jnp.float32)
    embed = 0.5 * jax.random.normal(k_emb, (TOKEN_NUM, D_K), dtype=jnp.float32)  # normal_(0, 0.5)
    w_query = 0.1 * jax.random.normal(k_wq, (NUM_UNITS, D_Q), dtype=jnp.float32)
    w_key = 0.1 * jax.random.normal(k_wk, (NUM_UNITS, D_K), dtype=jnp.float32)
    w_value = 0.1 * jax.random.normal(k_wv, (NUM_UNITS, D_K), dtype=jnp.float32)

    ref = reference_forward(inputs, embed, w_query, w_key, w_value)

    # f32 streaming path (exact reciprocal -> differences are only reassociation).
    out = gqdl_forward(inputs, embed, w_query, w_key, w_value)
    jax.block_until_ready(out)
    assert out.shape == (N, 1, NUM_UNITS), out.shape
    assert jnp.allclose(out, ref, atol=1e-4, rtol=1e-4), (
        float(jnp.max(jnp.abs(out - ref))))

    # bf16 streaming path (halves HBM traffic for the streamed tensors).
    out_bf16 = gqdl_forward(inputs, embed, w_query, w_key, w_value,
                            stream_dtype=jnp.bfloat16)
    jax.block_until_ready(out_bf16)
    ref_bf16_in = reference_forward(
        inputs.astype(jnp.bfloat16).astype(jnp.float32),
        embed, w_query, w_key, w_value)
    assert jnp.allclose(out_bf16.astype(jnp.float32), ref_bf16_in,
                        atol=1e-2, rtol=1e-2), (
        float(jnp.max(jnp.abs(out_bf16.astype(jnp.float32) - ref_bf16_in))))

    print("KERNEL_OK")
</pallas_src>

<mosaic_0001>
module attributes {stable_mosaic.version = 11 : i64} {
  func.func @gqdl_kernel(%arg0: i32, %arg1: memref<512x16xf32, #tpu.memory_space<vmem>>, %arg2: memref<16x32xf32, #tpu.memory_space<vmem>>, %arg3: memref<32x32xf32, #tpu.memory_space<vmem>>, %arg4: memref<32x32xf32, #tpu.memory_space<vmem>>, %arg5: memref<512x32xf32, #tpu.memory_space<vmem>>) attributes {dimension_semantics = [#tpu.dimension_semantics<parallel>], iteration_bounds = array<i64: 1>, scalar_prefetch = 0 : i64, scratch_operands = 0 : i64, tpu.core_type = #tpu.core_type<tc>, window_params = [{transform_indices = @transform_0, window_bounds = array<i64: 512, 16>}, {pipeline_mode = #tpu.pipeline_mode<synchronous>, transform_indices = @transform_1, window_bounds = array<i64: 16, 32>}, {pipeline_mode = #tpu.pipeline_mode<synchronous>, transform_indices = @transform_2, window_bounds = array<i64: 32, 32>}, {pipeline_mode = #tpu.pipeline_mode<synchronous>, transform_indices = @transform_3, window_bounds = array<i64: 32, 32>}, {transform_indices = @transform_4, window_bounds = array<i64: 512, 32>}]} {
    %c0 = arith.constant 0 : index
    %c0_0 = arith.constant 0 : index
    %0 = vector.load %arg1[%c0, %c0_0] : memref<512x16xf32, #tpu.memory_space<vmem>>, vector<512x16xf32>
    %c0_1 = arith.constant 0 : index
    %c0_2 = arith.constant 0 : index
    %1 = vector.load %arg2[%c0_1, %c0_2] : memref<16x32xf32, #tpu.memory_space<vmem>>, vector<16x32xf32>
    %cst = arith.constant dense<0.000000e+00> : vector<512x32xf32>
    %2 = tpu.matmul %0, %1, %cst {dimension_numbers = #tpu.dot_dimension_numbers<[1], [0], [0], [1], [0, 0, 1, 1], [], []>} : vector<512x16xf32>, vector<16x32xf32>, vector<512x32xf32> -> vector<512x32xf32>
    %cst_3 = arith.constant dense<0xFF800000> : vector<512xf32>
    %3 = vector.multi_reduction <maximumf>, %2, %cst_3 [1] : vector<512x32xf32> to vector<512xf32>
    %4 = vector.shape_cast %3 : vector<512xf32> to vector<512x1xf32>
    %5 = vector.broadcast %4 : vector<512x1xf32> to vector<512x32xf32>
    %6 = arith.subf %2, %5 : vector<512x32xf32>
    %7 = math.exp %6 : vector<512x32xf32>
    %c0_4 = arith.constant 0 : index
    %c0_5 = arith.constant 0 : index
    %8 = vector.load %arg3[%c0_4, %c0_5] : memref<32x32xf32, #tpu.memory_space<vmem>>, vector<32x32xf32>
    %cst_6 = arith.constant dense<0.000000e+00> : vector<512x32xf32>
    %9 = tpu.matmul %7, %8, %cst_6 {dimension_numbers = #tpu.dot_dimension_numbers<[1], [0], [0], [1], [0, 0, 1, 1], [], []>} : vector<512x32xf32>, vector<32x32xf32>, vector<512x32xf32> -> vector<512x32xf32>
    %10 = tpu.reciprocal %9 : vector<512x32xf32> -> vector<512x32xf32>
    %11 = arith.mulf %7, %10 : vector<512x32xf32>
    %c0_7 = arith.constant 0 : index
    %c0_8 = arith.constant 0 : index
    %12 = vector.load %arg4[%c0_7, %c0_8] : memref<32x32xf32, #tpu.memory_space<vmem>>, vector<32x32xf32>
    %cst_9 = arith.constant dense<0.000000e+00> : vector<512x32xf32>
    %13 = tpu.matmul %11, %12, %cst_9 {dimension_numbers = #tpu.dot_dimension_numbers<[1], [0], [0], [1], [0, 0, 1, 1], [], []>} : vector<512x32xf32>, vector<32x32xf32>, vector<512x32xf32> -> vector<512x32xf32>
    %c0_10 = arith.constant 0 : index
    %c0_11 = arith.constant 0 : index
    %14 = vector.load %arg5[%c0_10, %c0_11] : memref<512x32xf32, #tpu.memory_space<vmem>>, vector<512x32xf32>
    tpu.vector_store %arg5[%c0_10, %c0_11], %13 {strides = array<i32>} : memref<512x32xf32, #tpu.memory_space<vmem>>, vector<512x32xf32>,
    return
  }
  func.func @transform_0(%arg0: i32) -> (i32, i32) {
    %c0_i32 = arith.constant 0 : i32
    %c0_i32_0 = arith.constant 0 : i32
    return %arg0, %c0_i32 : i32, i32
  }
  func.func @transform_1(%arg0: i32) -> (i32, i32) {
    %c0_i32 = arith.constant 0 : i32
    %c0_i32_0 = arith.constant 0 : i32
    %c0_i32_1 = arith.constant 0 : i32
    return %c0_i32, %c0_i32_0 : i32, i32
  }
  func.func @transform_2(%arg0: i32) -> (i32, i32) {
    %c0_i32 = arith.constant 0 : i32
    %c0_i32_0 = arith.constant 0 : i32
    %c0_i32_1 = arith.constant 0 : i32
    return %c0_i32, %c0_i32_0 : i32, i32
  }
  func.func @transform_3(%arg0: i32) -> (i32, i32) {
    %c0_i32 = arith.constant 0 : i32
    %c0_i32_0 = arith.constant 0 : i32
    %c0_i32_1 = arith.constant 0 : i32
    return %c0_i32, %c0_i32_0 : i32, i32
  }
  func.func @transform_4(%arg0: i32) -> (i32, i32) {
    %c0_i32 = arith.constant 0 : i32
    %c0_i32_0 = arith.constant 0 : i32
    return %arg0, %c0_i32 : i32, i32
  }
}

</mosaic_0001>

<bundles_post_ra>
// kernel: tpu_custom_call.1
= control target key start
LH: loop header
LB: loop body
LE: loop exit
PB: predicated region body
PF: predicated region fallthrough
CT: control target
= control target key end

     0   :  { %vm83_vm0 = vcmask 130048   ;;  %vm661_vm1 = vcmask 261120   ;;  %s4655_s1 = inlined_call_operand.vmem [shape: f32[16,32], index: 1, kind: input, shape index: {}]   ;;  %s4656_s0 = inlined_call_operand.vmem [shape: f32[512,16], index: 0, kind: input, shape index: {}]   ;;  %s4657_s2 = inlined_call_operand.vmem [shape: f32[32,32], index: 2, kind: input, shape index: {}]   ;;  %s4658_s3 = inlined_call_operand.vmem [shape: f32[32,32], index: 3, kind: input, shape index: {}]   ;;  %s4659_s4 = inlined_call_operand.vmem [shape: f32[512,32], index: 4, kind: output, shape index: {}]  }
   0x1   :  { %v81_v0 = vld [vmem:[%s4655_s1] sm:$0xff]  ;;  %v82_v1 = vld [vmem:[%s4655_s1 + $0x8] sm:$0xff]  ;;  %v19_v5 = vld [vmem:[%s4656_s0 + $0x10] sm:$0xff] }
   0x2   :  { %v17_v2 = vld [vmem:[%s4656_s0] sm:$0xff]  ;;  %v3106_v3 = vpack.c.bf16 %v82_v1, %v81_v0  ;;  %v18_v4 = vld [vmem:[%s4656_s0 + $0x8] sm:$0xff]  ;;  %v20_v6 = vld [vmem:[%s4656_s0 + $0x18] sm:$0xff] }
   0x3   :  { %2802 = vmatprep.mubr.msk.f32.mxu0 %vm83_vm0, %v17_v2  ;;  %v21_v7 = vld [vmem:[%s4656_s0 + $0x20] sm:$0xff]  ;;  %v50_v9 = vld [vmem:[%s4656_s0 + $0x108] sm:$0xff]  ;;  %v51_v11 = vld [vmem:[%s4656_s0 + $0x110] sm:$0xff] }
   0x4   :  { %3107 = vmatprep.subr.bf16.mxu0 %v3106_v3  ;;  %3126 = vmatprep.subr.bf16.mxu1 %v3106_v3  ;;  %v49_v8 = vld [vmem:[%s4656_s0 + $0x100] sm:$0xff]  ;;  %v22_v10 = vld [vmem:[%s4656_s0 + $0x28] sm:$0xff]  ;;  %v23_v12 = vld [vmem:[%s4656_s0 + $0x30] sm:$0xff] }
   0x5   :  { %3109 = vmatpush3.bf16.msra.mxu0 %v3106_v3  ;;  %3127 = vmatpush3.bf16.msra.mxu1 %v3106_v3  ;;  %v52_v13 = vld [vmem:[%s4656_s0 + $0x118] sm:$0xff]  ;;  %v53_v14 = vld [vmem:[%s4656_s0 + $0x120] sm:$0xff]  ;;  %v54_v17 = vld [vmem:[%s4656_s0 + $0x128] sm:$0xff] }
   0x6   :  { %2850 = vmatprep.mubr.msk.f32.mxu1 %vm83_vm0, %v49_v8  ;;  %v24_v15 = vld [vmem:[%s4656_s0 + $0x38] sm:$0xff]  ;;  %v25_v16 = vld [vmem:[%s4656_s0 + $0x40] sm:$0xff]  ;;  %v55_v18 = vld [vmem:[%s4656_s0 + $0x130] sm:$0xff] }
   0x7   :  { %v26_v19 = vld [vmem:[%s4656_s0 + $0x48] sm:$0xff]  ;;  %v27_v20 = vld [vmem:[%s4656_s0 + $0x50] sm:$0xff]  ;;  %v56_v21 = vld [vmem:[%s4656_s0 + $0x138] sm:$0xff] }
   0x8   :  { %2803 = vmatmul.mubr.msk.f32.vlgmr.msra.gmra.mrb[0].mxu0 %vm83_vm0, %v18_v4  ;;  %2851 = vmatmul.mubr.msk.f32.vlgmr.msra.gmra.mrb[0].mxu1 %vm83_vm0, %v50_v9  ;;  %v57_v22 = vld [vmem:[%s4656_s0 + $0x140] sm:$0xff]  ;;  %v28_v23 = vld [vmem:[%s4656_s0 + $0x58] sm:$0xff]  ;;  %v58_v25 = vld [vmem:[%s4656_s0 + $0x148] sm:$0xff] }
   0x9   :  { %2805 = vmatprep.mubr.msk.f32.mxu0 %vm83_vm0, %v19_v5  ;;  %2853 = vmatprep.mubr.msk.f32.mxu1 %vm83_vm0, %v51_v11  ;;  %v29_v24 = vld [vmem:[%s4656_s0 + $0x60] sm:$0xff]  ;;  %v59_v26 = vld [vmem:[%s4656_s0 + $0x150] sm:$0xff]  ;;  %v30_v27 = vld [vmem:[%s4656_s0 + $0x68] sm:$0xff] }
   0xa   :  { %v31_v28 = vld [vmem:[%s4656_s0 + $0x70] sm:$0xff]  ;;  %v60_v29 = vld [vmem:[%s4656_s0 + $0x158] sm:$0xff]  ;;  %v61_v30 = vld [vmem:[%s4656_s0 + $0x160] sm:$0xff] }
   0xb   :  { %v32_v31 = vld [vmem:[%s4656_s0 + $0x78] sm:$0xff]  ;;  %v33_v32 = vld [vmem:[%s4656_s0 + $0x80] sm:$0xff]  ;;  %v62_v33 = vld [vmem:[%s4656_s0 + $0x168] sm:$0xff] }
   0xc   :  { %2806 = vmatmul.mubr.msk.f32.gmra.mrb[2].mxu0 %vm83_vm0, %v20_v6  ;;  %2854 = vmatmul.mubr.msk.f32.gmra.mrb[2].mxu1 %vm83_vm0, %v52_v13  ;;  %v63_v34 = vld [vmem:[%s4656_s0 + $0x170] sm:$0xff]  ;;  %v34_v35 = vld [vmem:[%s4656_s0 + $0x88] sm:$0xff]  ;;  %v64_v37 = vld [vmem:[%s4656_s0 + $0x178] sm:$0xff] }
   0xd   :  { %2808 = vmatprep.mubr.msk.f32.mxu0 %vm83_vm0, %v21_v7  ;;  %2856 = vmatprep.mubr.msk.f32.mxu1 %vm83_vm0, %v53_v14  ;;  %v35_v36 = vld [vmem:[%s4656_s0 + $0x90] sm:$0xff]  ;;  %v65_v38 = vld [vmem:[%s4656_s0 + $0x180] sm:$0xff]  ;;  %v36_v39 = vld [vmem:[%s4656_s0 + $0x98] sm:$0xff] }
   0xe   :  { %v37_v40 = vld [vmem:[%s4656_s0 + $0xa0] sm:$0xff]  ;;  %v66_v41 = vld [vmem:[%s4656_s0 + $0x188] sm:$0xff]  ;;  %v67_v42 = vld [vmem:[%s4656_s0 + $0x190] sm:$0xff] }
   0xf   :  { %v38_v43 = vld [vmem:[%s4656_s0 + $0xa8] sm:$0xff]  ;;  %v39_v44 = vld [vmem:[%s4656_s0 + $0xb0] sm:$0xff]  ;;  %v68_v45 = vld [vmem:[%s4656_s0 + $0x198] sm:$0xff] }
  0x10   :  { %2809 = vmatmul.mubr.msk.f32.gmra.mrb[4].mxu0 %vm83_vm0, %v22_v10  ;;  %2857 = vmatmul.mubr.msk.f32.gmra.mrb[4].mxu1 %vm83_vm0, %v54_v17  ;;  %v69_v46 = vld [vmem:[%s4656_s0 + $0x1a0] sm:$0xff]  ;;  %v40_v47 = vld [vmem:[%s4656_s0 + $0xb8] sm:$0xff]  ;;  %v70_v49 = vld [vmem:[%s4656_s0 + $0x1a8] sm:$0xff] }
  0x11   :  { %2811 = vmatprep.mubr.msk.f32.mxu0 %vm83_vm0, %v23_v12  ;;  %2859 = vmatprep.mubr.msk.f32.mxu1 %vm83_vm0, %v55_v18  ;;  %v41_v48 = vld [vmem:[%s4656_s0 + $0xc0] sm:$0xff]  ;;  %v71_v50 = vld [vmem:[%s4656_s0 + $0x1b0] sm:$0xff]  ;;  %v42_v51 = vld [vmem:[%s4656_s0 + $0xc8] sm:$0xff] }
  0x12   :  { %v43_v52 = vld [vmem:[%s4656_s0 + $0xd0] sm:$0xff]  ;;  %v72_v53 = vld [vmem:[%s4656_s0 + $0x1b8] sm:$0xff]  ;;  %v73_v54 = vld [vmem:[%s4656_s0 + $0x1c0] sm:$0xff] }
  0x13   :  { %v44_v55 = vld [vmem:[%s4656_s0 + $0xd8] sm:$0xff]  ;;  %v45_v56 = vld [vmem:[%s4656_s0 + $0xe0] sm:$0xff]  ;;  %v74_v57 = vld [vmem:[%s4656_s0 + $0x1c8] sm:$0xff] }
  0x14   :  { %2812 = vmatmul.mubr.msk.f32.gmra.mrb[6].mxu0 %vm83_vm0, %v24_v15  ;;  %2860 = vmatmul.mubr.msk.f32.gmra.mrb[6].mxu1 %vm83_vm0, %v56_v21  ;;  %v75_v58 = vld [vmem:[%s4656_s0 + $0x1d0] sm:$0xff]  ;;  %v46_v59 = vld [vmem:[%s4656_s0 + $0xe8] sm:$0xff]  ;;  %v76_v61 = vld [vmem:[%s4656_s0 + $0x1d8] sm:$0xff] }
  0x15   :  { %2814 = vmatprep.mubr.msk.f32.mxu0 %vm83_vm0, %v25_v16  ;;  %2862 = vmatprep.mubr.msk.f32.mxu1 %vm83_vm0, %v57_v22  ;;  %v47_v60 = vld [vmem:[%s4656_s0 + $0xf0] sm:$0xff]  ;;  %v77_v62 = vld [vmem:[%s4656_s0 + $0x1e0] sm:$0xff]  ;;  %v48_v63 = vld [vmem:[%s4656_s0 + $0xf8] sm:$0xff] }
  0x16   :  { %v78_v0 = vld [vmem:[%s4656_s0 + $0x1e8] sm:$0xff]  ;;  %v79_v1 = vld [vmem:[%s4656_s0 + $0x1f0] sm:$0xff]  ;;  %v80_v2 = vld [vmem:[%s4656_s0 + $0x1f8] sm:$0xff] }
  0x17   :  { %v1046_v3 = vld [vmem:[%s4657_s2] sm:$0xff]  ;;  %v1047_v4 = vld [vmem:[%s4657_s2 + $0x8] sm:$0xff]  ;;  %v1048_v6 = vld [vmem:[%s4657_s2 + $0x10] sm:$0xff] }
  0x18   :  { %2815 = vmatmul.mubr.msk.f32.gmra.mrb[8].mxu0 %vm83_vm0, %v26_v19  ;;  %2863 = vmatmul.mubr.msk.f32.gmra.mrb[8].mxu1 %vm83_vm0, %v58_v25  ;;  %v3110_v5 = vpack.c.bf16 %v1047_v4, %v1046_v3  ;;  %v1049_v7 = vld [vmem:[%s4657_s2 + $0x18] sm:$0xff] }
  0x19   :  { %2817 = vmatprep.mubr.msk.f32.mxu0 %vm83_vm0, %v27_v20  ;;  %2865 = vmatprep.mubr.msk.f32.mxu1 %vm83_vm0, %v59_v26  ;;  %v3114_v9 = vpack.c.bf16 %v1049_v7, %v1048_v6 }
  0x1a   :  { %3111 = vmatprep.subr.bf16.mxu1 %v3110_v5 }
  0x1b   :  { %3113 = vmatpush3.bf16.msra.mxu1 %v3110_v5 }
  0x1c   :  { %2818 = vmatmul.mubr.msk.f32.gmra.mrb[10].mxu0 %vm83_vm0, %v28_v23  ;;  %2866 = vmatmul.mubr.msk.f32.gmra.mrb[10].mxu1 %vm83_vm0, %v60_v29 }
  0x1d   :  { %2820 = vmatprep.mubr.msk.f32.mxu0 %vm83_vm0, %v29_v24  ;;  %2868 = vmatprep.mubr.msk.f32.mxu1 %vm83_vm0, %v61_v30 }
  0x1e   :  { %3115 = vmatprep.subr.bf16.mxu1 %v3114_v9 }
  0x1f   :  { %3117 = vmatpush3.bf16.msra.mxu1 %v3114_v9 }
  0x20   :  { %2821 = vmatmul.mubr.msk.f32.gmra.mrb[12].mxu0 %vm83_vm0, %v30_v27  ;;  %2869 = vmatmul.mubr.msk.f32.gmra.mrb[12].mxu1 %vm83_vm0, %v62_v33 }
  0x21   :  { %2823 = vmatprep.mubr.msk.f32.mxu0 %vm83_vm0, %v31_v28  ;;  %2871 = vmatprep.mubr.msk.f32.mxu1 %vm83_vm0, %v63_v34 }
  0x24   :  { %2824 = vmatmul.mubr.msk.f32.gmra.mrb[14].mxu0 %vm83_vm0, %v32_v31  ;;  %2872 = vmatmul.mubr.msk.f32.gmra.mrb[14].mxu1 %vm83_vm0, %v64_v37 }
  0x25   :  { %2826 = vmatprep.mubr.msk.f32.mxu0 %vm83_vm0, %v33_v32  ;;  %2874 = vmatprep.mubr.msk.f32.mxu1 %vm83_vm0, %v65_v38 }
  0x28   :  { %2827 = vmatmul.mubr.msk.f32.gmra.mrb[16].mxu0 %vm83_vm0, %v34_v35  ;;  %2875 = vmatmul.mubr.msk.f32.gmra.mrb[16].mxu1 %vm83_vm0, %v66_v41 }
  0x29   :  { %2829 = vmatprep.mubr.msk.f32.mxu0 %vm83_vm0, %v35_v36  ;;  %2877 = vmatprep.mubr.msk.f32.mxu1 %vm83_vm0, %v67_v42 }
  0x2c   :  { %2830 = vmatmul.mubr.msk.f32.gmra.mrb[18].mxu0 %vm83_vm0, %v36_v39  ;;  %2878 = vmatmul.mubr.msk.f32.gmra.mrb[18].mxu1 %vm83_vm0, %v68_v45 }
  0x2d   :  { %2832 = vmatprep.mubr.msk.f32.mxu0 %vm83_vm0, %v37_v40  ;;  %2880 = vmatprep.mubr.msk.f32.mxu1 %vm83_vm0, %v69_v46 }
  0x30   :  { %2833 = vmatmul.mubr.msk.f32.gmra.mrb[20].mxu0 %vm83_vm0, %v38_v43  ;;  %2881 = vmatmul.mubr.msk.f32.gmra.mrb[20].mxu1 %vm83_vm0, %v70_v49 }
  0x31   :  { %2835 = vmatprep.mubr.msk.f32.mxu0 %vm83_vm0, %v39_v44  ;;  %2883 = vmatprep.mubr.msk.f32.mxu1 %vm83_vm0, %v71_v50 }
  0x34   :  { %2836 = vmatmul.mubr.msk.f32.gmra.mrb[22].mxu0 %vm83_vm0, %v40_v47  ;;  %2884 = vmatmul.mubr.msk.f32.gmra.mrb[22].mxu1 %vm83_vm0, %v72_v53 }
  0x35   :  { %2838 = vmatprep.mubr.msk.f32.mxu0 %vm83_vm0, %v41_v48  ;;  %2886 = vmatprep.mubr.msk.f32.mxu1 %vm83_vm0, %v73_v54 }
  0x38   :  { %2839 = vmatmul.mubr.msk.f32.gmra.mrb[24].mxu0 %vm83_vm0, %v42_v51  ;;  %2887 = vmatmul.mubr.msk.f32.gmra.mrb[24].mxu1 %vm83_vm0, %v74_v57 }
  0x39   :  { %2841 = vmatprep.mubr.msk.f32.mxu0 %vm83_vm0, %v43_v52  ;;  %2889 = vmatprep.mubr.msk.f32.mxu1 %vm83_vm0, %v75_v58 }
  0x3c   :  { %2842 = vmatmul.mubr.msk.f32.gmra.mrb[26].mxu0 %vm83_vm0, %v44_v55  ;;  %2890 = vmatmul.mubr.msk.f32.gmra.mrb[26].mxu1 %vm83_vm0, %v76_v61 }
  0x3d   :  { %2844 = vmatprep.mubr.msk.f32.mxu0 %vm83_vm0, %v45_v56  ;;  %2892 = vmatprep.mubr.msk.f32.mxu1 %vm83_vm0, %v77_v62 }
  0x40   :  { %2845 = vmatmul.mubr.msk.f32.gmra.mrb[28].mxu0 %vm83_vm0, %v46_v59  ;;  %2893 = vmatmul.mubr.msk.f32.gmra.mrb[28].mxu1 %vm83_vm0, %v78_v0 }
  0x41   :  { %2847 = vmatprep.mubr.msk.f32.mxu0 %vm83_vm0, %v47_v60  ;;  %2895 = vmatprep.mubr.msk.f32.mxu1 %vm83_vm0, %v79_v1 }
  0x44   :  { %2848 = vmatmul.mubr.msk.f32.gmra.mrb[30].mxu0 %vm83_vm0, %v48_v63  ;;  %2896 = vmatmul.mubr.msk.f32.gmra.mrb[30].mxu1 %vm83_vm0, %v80_v2 }
  0xdb   :  { %v3683_v8 = vpop.f32.mrb[0].mxu0  ;;  %v3697_v16 = vpop.f32.mrb[0].mxu1 }
  0xdc   :  { %v3685_v10 = vpop.f32.mrb[1].mxu0  ;;  %v665_v14 = vsel %vm661_vm1, %v3683_v8, -inf  ;;  %v3699_v17 = vpop.f32.mrb[1].mxu1 }
  0xdd   :  { %v662_v11 = vsel %vm661_vm1, %v3685_v10, -inf  ;;  %4686 = vst [vmem:[#allocation2_spill] sm:$0xff] %v3699_v17 }
  0xde   :  { %663 = vmax.xlane.f32.xlu0 %v662_v11 }
  0xdf   :  { %v3689_v12 = vpop.f32.mrb[2].mxu0  ;;  %v3709_v22 = vpop.f32.mrb[2].mxu1 }
  0xe0   :  { %v3691_v13 = vpop.f32.mrb[3].mxu0  ;;  %v671_v20 = vsel %vm661_vm1, %v3689_v12, -inf  ;;  %v3711_v23 = vpop.f32.mrb[3].mxu1 }
  0xe1   :  { %v668_v15 = vsel %vm661_vm1, %v3691_v13, -inf }
  0xe2   :  { %666 = vmax.xlane.f32.xlu0 %v665_v14  ;;  %669 = vmax.xlane.f32.xlu1 %v668_v15 }
  0xe3   :  { %v3701_v18 = vpop.f32.mrb[4].mxu0  ;;  %v3721_v28 = vpop.f32.mrb[4].mxu1 }
  0xe4   :  { %v3703_v19 = vpop.f32.mrb[5].mxu0  ;;  %v677_v26 = vsel %vm661_vm1, %v3701_v18, -inf  ;;  %v3723_v29 = vpop.f32.mrb[5].mxu1 }
  0xe5   :  { %v674_v21 = vsel %vm661_vm1, %v3703_v19, -inf }
  0xe6   :  { %672 = vmax.xlane.f32.xlu1 %v671_v20  ;;  %675 = vmax.xlane.f32.xlu0 %v674_v21 }
  0xe7   :  { %v3713_v24 = vpop.f32.mrb[6].mxu0  ;;  %v3733_v34 = vpop.f32.mrb[6].mxu1 }
  0xe8   :  { %v3715_v25 = vpop.f32.mrb[7].mxu0  ;;  %v683_v32 = vsel %vm661_vm1, %v3713_v24, -inf  ;;  %v3735_v35 = vpop.f32.mrb[7].mxu1 }
  0xe9   :  { %v680_v27 = vsel %vm661_vm1, %v3715_v25, -inf }
  0xea   :  { %678 = vmax.xlane.f32.xlu1 %v677_v26  ;;  %681 = vmax.xlane.f32.xlu0 %v680_v27 }
  0xeb   :  { %v3725_v30 = vpop.f32.mrb[8].mxu0  ;;  %v3745_v40 = vpop.f32.mrb[8].mxu1 }
  0xec   :  { %v3727_v31 = vpop.f32.mrb[9].mxu0  ;;  %v689_v38 = vsel %vm661_vm1, %v3725_v30, -inf  ;;  %v3747_v41 = vpop.f32.mrb[9].mxu1 }
  0xed   :  { %v686_v33 = vsel %vm661_vm1, %v3727_v31, -inf }
  0xee   :  { %684 = vmax.xlane.f32.xlu1 %v683_v32  ;;  %687 = vmax.xlane.f32.xlu0 %v686_v33 }
  0xef   :  { %v3737_v36 = vpop.f32.mrb[10].mxu0  ;;  %v3757_v46 = vpop.f32.mrb[10].mxu1 }
  0xf0   :  { %v3739_v37 = vpop.f32.mrb[11].mxu0  ;;  %v695_v44 = vsel %vm661_vm1, %v3737_v36, -inf  ;;  %v3759_v47 = vpop.f32.mrb[11].mxu1 }
  0xf1   :  { %v692_v39 = vsel %vm661_vm1, %v3739_v37, -inf }
  0xf2   :  { %690 = vmax.xlane.f32.xlu1 %v689_v38  ;;  %693 = vmax.xlane.f32.xlu0 %v692_v39 }
  0xf3   :  { %v3749_v42 = vpop.f32.mrb[12].mxu0  ;;  %v3769_v52 = vpop.f32.mrb[12].mxu1 }
  0xf4   :  { %v3751_v43 = vpop.f32.mrb[13].mxu0  ;;  %v701_v50 = vsel %vm661_vm1, %v3749_v42, -inf  ;;  %v3771_v53 = vpop.f32.mrb[13].mxu1 }
  0xf5   :  { %v698_v45 = vsel %vm661_vm1, %v3751_v43, -inf }
  0xf6   :  { %696 = vmax.xlane.f32.xlu1 %v695_v44  ;;  %699 = vmax.xlane.f32.xlu0 %v698_v45 }
  0xf7   :  { %v3761_v48 = vpop.f32.mrb[14].mxu0  ;;  %v3781_v58 = vpop.f32.mrb[14].mxu1 }
  0xf8   :  { %v3763_v49 = vpop.f32.mrb[15].mxu0  ;;  %v707_v56 = vsel %vm661_vm1, %v3761_v48, -inf  ;;  %v3783_v59 = vpop.f32.mrb[15].mxu1 }
  0xf9   :  { %v704_v51 = vsel %vm661_vm1, %v3763_v49, -inf }
  0xfa   :  { %702 = vmax.xlane.f32.xlu1 %v701_v50  ;;  %705 = vmax.xlane.f32.xlu0 %v704_v51 }
  0xfb   :  { %v3773_v54 = vpop.f32.mrb[16].mxu0  ;;  %v3793_v0 = vpop.f32.mrb[16].mxu1 }
  0xfc   :  { %v3775_v55 = vpop.f32.mrb[17].mxu0  ;;  %v713_v62 = vsel %vm661_vm1, %v3773_v54, -inf  ;;  %v3795_v1 = vpop.f32.mrb[17].mxu1 }
  0xfd   :  { %v710_v57 = vsel %vm661_vm1, %v3775_v55, -inf }
  0xfe   :  { %708 = vmax.xlane.f32.xlu1 %v707_v56  ;;  %711 = vmax.xlane.f32.xlu0 %v710_v57 }
  0xff   :  { %v3785_v60 = vpop.f32.mrb[18].mxu0  ;;  %v3805_v6 = vpop.f32.mrb[18].mxu1 }
 0x100   :  { %v3787_v61 = vpop.f32.mrb[19].mxu0  ;;  %v719_v4 = vsel %vm661_vm1, %v3785_v60, -inf  ;;  %v3807_v7 = vpop.f32.mrb[19].mxu1 }
 0x101   :  { %v716_v63 = vsel %vm661_vm1, %v3787_v61, -inf }
 0x102   :  { %714 = vmax.xlane.f32.xlu1 %v713_v62  ;;  %717 = vmax.xlane.f32.xlu0 %v716_v63 }
 0x103   :  { %v3797_v2 = vpop.f32.mrb[20].mxu0  ;;  %v3817_v20 = vpop.f32.mrb[20].mxu1 }
 0x104   :  { %v3799_v3 = vpop.f32.mrb[21].mxu0  ;;  %v725_v14 = vsel %vm661_vm1, %v3797_v2, -inf  ;;  %v3819_v21 = vpop.f32.mrb[21].mxu1 }
 0x105   :  { %v722_v5 = vsel %vm661_vm1, %v3799_v3, -inf }
 0x106   :  { %720 = vmax.xlane.f32.xlu1 %v719_v4  ;;  %723 = vmax.xlane.f32.xlu0 %v722_v5 }
 0x107   :  { %v3809_v9 = vpop.f32.mrb[22].mxu0  ;;  %v3829_v38 = vpop.f32.mrb[22].mxu1 }
 0x108   :  { %v3811_v11 = vpop.f32.mrb[23].mxu0  ;;  %v731_v32 = vsel %vm661_vm1, %v3809_v9, -inf  ;;  %v3831_v39 = vpop.f32.mrb[23].mxu1 }
 0x109   :  { %v728_v15 = vsel %vm661_vm1, %v3811_v11, -inf }
 0x10a   :  { %726 = vmax.xlane.f32.xlu1 %v725_v14  ;;  %729 = vmax.xlane.f32.xlu0 %v728_v15 }
 0x10b   :  { %v3821_v26 = vpop.f32.mrb[24].mxu0  ;;  %v3841_v56 = vpop.f32.mrb[24].mxu1 }
 0x10c   :  { %v3823_v27 = vpop.f32.mrb[25].mxu0  ;;  %v737_v50 = vsel %vm661_vm1, %v3821_v26, -inf  ;;  %4689 = vst [vmem:[#allocation5_spill] sm:$0xff] %v3841_v56  ;;  %v3843_v57 = vpop.f32.mrb[25].mxu1 }
 0x10d   :  { %v734_v33 = vsel %vm661_vm1, %v3823_v27, -inf  ;;  %4690 = vst [vmem:[#allocation6_spill] sm:$0xff] %v3843_v57 }
 0x10e   :  { %732 = vmax.xlane.f32.xlu1 %v731_v32  ;;  %735 = vmax.xlane.f32.xlu0 %v734_v33 }
 0x10f   :  { %v3833_v44 = vpop.f32.mrb[26].mxu0  ;;  %v3853_v14 = vpop.f32.mrb[26].mxu1 }
 0x110   :  { %4687 = vst [vmem:[#allocation3_spill] sm:$0xff] %v3833_v44  ;;  %v3835_v45 = vpop.f32.mrb[27].mxu0  ;;  %v743_v4 = vsel %vm661_vm1, %v3833_v44, -inf  ;;  %4693 = vst [vmem:[#allocation9_spill] sm:$0xff] %v3853_v14  ;;  %v3855_v15 = vpop.f32.mrb[27].mxu1 }
 0x111   :  { %4688 = vst [vmem:[#allocation4_spill] sm:$0xff] %v3835_v45  ;;  %v740_v51 = vsel %vm661_vm1, %v3835_v45, -inf  ;;  %4694 = vst [vmem:[#allocation10_spill] sm:$0xff] %v3855_v15 }
 0x112   :  { %738 = vmax.xlane.f32.xlu1 %v737_v50  ;;  %741 = vmax.xlane.f32.xlu0 %v740_v51 }
 0x113   :  { %v3845_v62 = vpop.f32.mrb[28].mxu0  ;;  %v3865_v44 = vpop.f32.mrb[28].mxu1 }
 0x114   :  { %4691 = vst [vmem:[#allocation7_spill] sm:$0xff] %v3845_v62  ;;  %v3847_v63 = vpop.f32.mrb[29].mxu0  ;;  %v749_v50 = vsel %vm661_vm1, %v3845_v62, -inf  ;;  %4696 = vst [vmem:[#allocation12_spill] sm:$0xff] %v3865_v44 }
 0x115   :  { %4692 = vst [vmem:[#allocation8_spill] sm:$0xff] %v3847_v63  ;;  %v746_v5 = vsel %vm661_vm1, %v3847_v63, -inf  ;;  %v3867_v63 = vpop.f32.mrb[29].mxu1 }
 0x116   :  { %744 = vmax.xlane.f32.xlu1 %v743_v4  ;;  %747 = vmax.xlane.f32.xlu0 %v746_v5  ;;  %4697 = vst [vmem:[#allocation13_spill] sm:$0xff] %v3867_v63  ;;  %v758_v4 = vsel %vm661_vm1, %v3699_v17, -inf  ;;  %v767_v17 = vsel %vm661_vm1, %v3709_v22, -inf }
 0x117   :  { %v3857_v32 = vpop.f32.mrb[30].mxu0  ;;  %v3873_v45 = vpop.f32.mrb[30].mxu1 }
 0x118   :  { %v3859_v33 = vpop.f32.mrb[31].mxu0  ;;  %v755_v5 = vsel %vm661_vm1, %v3857_v32, -inf  ;;  %4698 = vst [vmem:[#allocation14_spill] sm:$0xff] %v3873_v45  ;;  %v3875_v62 = vpop.f32.mrb[31].mxu1 }
 0x119   :  { %4695 = vst [vmem:[#allocation11_spill] sm:$0xff] %v3859_v33  ;;  %v752_v51 = vsel %vm661_vm1, %v3859_v33, -inf  ;;  %4699 = vst [vmem:[#allocation15_spill] sm:$0xff] %v3875_v62  ;;  %v764_v33 = vsel %vm661_vm1, %v3711_v23, -inf }
 0x11a   :  { %750 = vmax.xlane.f32.xlu1 %v749_v50  ;;  %753 = vmax.xlane.f32.xlu0 %v752_v51  ;;  %v761_v50 = vsel %vm661_vm1, %v3697_v16, -inf  ;;  %v770_v51 = vsel %vm661_vm1, %v3723_v29, -inf }
 0x11e   :  { %756 = vmax.xlane.f32.xlu1 %v755_v5  ;;  %759 = vmax.xlane.f32.xlu0 %v758_v4  ;;  %v776_v4 = vsel %vm661_vm1, %v3735_v35, -inf  ;;  %v773_v5 = vsel %vm661_vm1, %v3721_v28, -inf }
 0x122   :  { %762 = vmax.xlane.f32.xlu1 %v761_v50  ;;  %765 = vmax.xlane.f32.xlu0 %v764_v33  ;;  %v782_v50 = vsel %vm661_vm1, %v3747_v41, -inf  ;;  %v779_v33 = vsel %vm661_vm1, %v3733_v34, -inf }
 0x126   :  { %768 = vmax.xlane.f32.xlu1 %v767_v17  ;;  %771 = vmax.xlane.f32.xlu0 %v770_v51  ;;  %v788_v17 = vsel %vm661_vm1, %v3759_v47, -inf  ;;  %v785_v51 = vsel %vm661_vm1, %v3745_v40, -inf }
 0x12a   :  { %774 = vmax.xlane.f32.xlu1 %v773_v5  ;;  %777 = vmax.xlane.f32.xlu0 %v776_v4  ;;  %v794_v5 = vsel %vm661_vm1, %v3771_v53, -inf  ;;  %v791_v4 = vsel %vm661_vm1, %v3757_v46, -inf }
 0x12e   :  { %780 = vmax.xlane.f32.xlu1 %v779_v33  ;;  %783 = vmax.xlane.f32.xlu0 %v782_v50  ;;  %v800_v33 = vsel %vm661_vm1, %v3783_v59, -inf  ;;  %v797_v50 = vsel %vm661_vm1, %v3769_v52, -inf }
 0x132   :  { %786 = vmax.xlane.f32.xlu1 %v785_v51  ;;  %789 = vmax.xlane.f32.xlu0 %v788_v17  ;;  %v806_v51 = vsel %vm661_vm1, %v3795_v1, -inf  ;;  %v803_v17 = vsel %vm661_vm1, %v3781_v58, -inf }
 0x136   :  { %792 = vmax.xlane.f32.xlu1 %v791_v4  ;;  %795 = vmax.xlane.f32.xlu0 %v794_v5  ;;  %v812_v4 = vsel %vm661_vm1, %v3807_v7, -inf  ;;  %v809_v5 = vsel %vm661_vm1, %v3793_v0, -inf }
 0x13a   :  { %798 = vmax.xlane.f32.xlu1 %v797_v50  ;;  %801 = vmax.xlane.f32.xlu0 %v800_v33  ;;  %v818_v50 = vsel %vm661_vm1, %v3819_v21, -inf  ;;  %v815_v33 = vsel %vm661_vm1, %v3805_v6, -inf }
 0x13e   :  { %804 = vmax.xlane.f32.xlu1 %v803_v17  ;;  %807 = vmax.xlane.f32.xlu0 %v806_v51  ;;  %v824_v17 = vsel %vm661_vm1, %v3831_v39, -inf  ;;  %v821_v51 = vsel %vm661_vm1, %v3817_v20, -inf }
 0x142   :  { %810 = vmax.xlane.f32.xlu1 %v809_v5  ;;  %813 = vmax.xlane.f32.xlu0 %v812_v4  ;;  %v830_v5 = vsel %vm661_vm1, %v3843_v57, -inf  ;;  %v827_v4 = vsel %vm661_vm1, %v3829_v38, -inf }
 0x146   :  { %816 = vmax.xlane.f32.xlu1 %v815_v33  ;;  %819 = vmax.xlane.f32.xlu0 %v818_v50  ;;  %v836_v33 = vsel %vm661_vm1, %v3855_v15, -inf  ;;  %v833_v50 = vsel %vm661_vm1, %v3841_v56, -inf }
 0x14a   :  { %822 = vmax.xlane.f32.xlu1 %v821_v51  ;;  %825 = vmax.xlane.f32.xlu0 %v824_v17  ;;  %v842_v51 = vsel %vm661_vm1, %v3867_v63, -inf  ;;  %v839_v17 = vsel %vm661_vm1, %v3853_v14, -inf }
 0x14e   :  { %828 = vmax.xlane.f32.xlu1 %v827_v4  ;;  %831 = vmax.xlane.f32.xlu0 %v830_v5  ;;  %v848_v4 = vsel %vm661_vm1, %v3875_v62, -inf  ;;  %v845_v5 = vsel %vm661_vm1, %v3865_v44, -inf }
 0x152   :  { %834 = vmax.xlane.f32.xlu1 %v833_v50  ;;  %837 = vmax.xlane.f32.xlu0 %v836_v33  ;;  %v851_v50 = vsel %vm661_vm1, %v3873_v45, -inf }
 0x156   :  { %840 = vmax.xlane.f32.xlu1 %v839_v17  ;;  %843 = vmax.xlane.f32.xlu0 %v842_v51 }
 0x15a   :  { %846 = vmax.xlane.f32.xlu1 %v845_v5  ;;  %849 = vmax.xlane.f32.xlu0 %v848_v4 }
 0x15e   :  { %852 = vmax.xlane.f32.xlu1 %v851_v50 }
 0x16b   :  { %v664_v33 = vpop.xlane.xlu0 %663 }
 0x16c   :  { %v854_v63 = vsub.f32 %v3685_v10, %v664_v33 }
 0x16e   :  { %v918_v15 = vmul.f32 1.442695, %v854_v63 }
 0x16f   :  { %v667_v56 = vpop.xlane.xlu0 %666  ;;  %v670_v14 = vpop.xlane.xlu1 %669 }
 0x170   :  { %3128 = vpow2.f32 %v918_v15  ;;  %v855_v51 = vsub.f32 %v3683_v8, %v667_v56  ;;  %v856_v17 = vsub.f32 %v3691_v13, %v670_v14 }
 0x172   :  { %v920_v62 = vmul.f32 1.442695, %v855_v51  ;;  %v922_v57 = vmul.f32 1.442695, %v856_v17 }
 0x173   :  { %v673_v44 = vpop.xlane.xlu1 %672  ;;  %v676_v5 = vpop.xlane.xlu0 %675 }
 0x174   :  { %3130 = vpow2.f32 %v920_v62  ;;  %v857_v4 = vsub.f32 %v3689_v12, %v673_v44  ;;  %v858_v50 = vsub.f32 %v3703_v19, %v676_v5 }
 0x175   :  { %3132 = vpow2.f32 %v922_v57 }
 0x176   :  { %v924_v45 = vmul.f32 1.442695, %v857_v4  ;;  %v926_v10 = vmul.f32 1.442695, %v858_v50 }
 0x177   :  { %v679_v63 = vpop.xlane.xlu1 %678  ;;  %v682_v33 = vpop.xlane.xlu0 %681 }
 0x178   :  { %3134 = vpow2.f32 %v924_v45  ;;  %v859_v15 = vsub.f32 %v3701_v18, %v679_v63  ;;  %v860_v8 = vsub.f32 %v3715_v25, %v682_v33  ;;  %v1755_v18 = vld [vmem:[%s4658_s3] sm:$0xff]  ;;  %v1756_v25 = vld [vmem:[%s4658_s3 + $0x8] sm:$0xff]  ;;  %v1757_v45 = vld [vmem:[%s4658_s3 + $0x10] sm:$0xff] }
 0x179   :  { %3136 = vpow2.f32 %v926_v10  ;;  %v3118_v62 = vpack.c.bf16 %v1756_v25, %v1755_v18 }
 0x17a   :  { %v3946_v13 = vpop.eup %3128  ;;  %v928_v56 = vmul.f32 1.442695, %v859_v15  ;;  %v930_v14 = vmul.f32 1.442695, %v860_v8 }
 0x17b   :  { %2906 = vmatprep.mubr.msk.f32.mxu1 %vm661_vm1, %v3946_v13  ;;  %v685_v12 = vpop.xlane.xlu1 %684  ;;  %v688_v19 = vpop.xlane.xlu0 %687  ;;  %3119 = vmatprep.subr.bf16.mxu0 %v3118_v62 }
 0x17c   :  { %3138 = vpow2.f32 %v928_v56  ;;  %v861_v44 = vsub.f32 %v3713_v24, %v685_v12  ;;  %v862_v57 = vsub.f32 %v3727_v31, %v688_v19  ;;  %v1758_v24 = vld [vmem:[%s4658_s3 + $0x18] sm:$0xff]  ;;  %3121 = vmatpush3.bf16.msra.mxu0 %v3118_v62 }
 0x17d   :  { %3140 = vpow2.f32 %v930_v14  ;;  %v3122_v5 = vpack.c.bf16 %v1758_v24, %v1757_v45 }
 0x17e   :  { %v3964_v51 = vpop.eup %3130  ;;  %v932_v31 = vmul.f32 1.442695, %v861_v44  ;;  %v934_v17 = vmul.f32 1.442695, %v862_v57 }
 0x17f   :  { %v3966_v4 = vpop.eup %3132  ;;  %2907 = vmatmul.mubr.msk.f32.vlgmr.msra.gmra.mrb[32].mxu1 %vm661_vm1, %v3964_v51  ;;  %v691_v50 = vpop.xlane.xlu1 %690  ;;  %3123 = vmatprep.subr.bf16.mxu0 %v3122_v5 }
 0x180   :  { %v694_v10 = vpop.xlane.xlu0 %693  ;;  %3142 = vpow2.f32 %v932_v31  ;;  %v863_v63 = vsub.f32 %v3725_v30, %v691_v50  ;;  %2909 = vmatprep.mubr.msk.f32.mxu1 %vm661_vm1, %v3966_v4  ;;  %3125 = vmatpush3.bf16.msra.mxu0 %v3122_v5 }
 0x181   :  { %v864_v33 = vsub.f32 %v3739_v37, %v694_v10  ;;  %3144 = vpow2.f32 %v934_v17 }
 0x182   :  { %v3974_v15 = vpop.eup %3134  ;;  %v936_v8 = vmul.f32 1.442695, %v863_v63 }
 0x183   :  { %v938_v56 = vmul.f32 1.442695, %v864_v33  ;;  %v3976_v14 = vpop.eup %3136  ;;  %2910 = vmatmul.mubr.msk.f32.gmra.mrb[34].mxu1 %vm661_vm1, %v3974_v15  ;;  %v697_v12 = vpop.xlane.xlu1 %696 }
 0x184   :  { %v700_v19 = vpop.xlane.xlu0 %699  ;;  %3146 = vpow2.f32 %v936_v8  ;;  %v865_v30 = vsub.f32 %v3737_v36, %v697_v12  ;;  %2912 = vmatprep.mubr.msk.f32.mxu1 %vm661_vm1, %v3976_v14 }
 0x185   :  { %v866_v37 = vsub.f32 %v3751_v43, %v700_v19  ;;  %3148 = vpow2.f32 %v938_v56 }
 0x186   :  { %v3984_v44 = vpop.eup %3138  ;;  %v940_v57 = vmul.f32 1.442695, %v865_v30 }
 0x187   :  { %v942_v18 = vmul.f32 1.442695, %v866_v37  ;;  %v3986_v25 = vpop.eup %3140  ;;  %2913 = vmatmul.mubr.msk.f32.gmra.mrb[36].mxu1 %vm661_vm1, %v3984_v44  ;;  %v703_v45 = vpop.xlane.xlu1 %702 }
 0x188   :  { %v706_v62 = vpop.xlane.xlu0 %705  ;;  %3150 = vpow2.f32 %v940_v57  ;;  %v867_v36 = vsub.f32 %v3749_v42, %v703_v45  ;;  %2915 = vmatprep.mubr.msk.f32.mxu1 %vm661_vm1, %v3986_v25 }
 0x189   :  { %v868_v43 = vsub.f32 %v3763_v49, %v706_v62  ;;  %3152 = vpow2.f32 %v942_v18 }
 0x18a   :  { %v3994_v24 = vpop.eup %3142  ;;  %v944_v31 = vmul.f32 1.442695, %v867_v36 }
 0x18b   :  { %v946_v17 = vmul.f32 1.442695, %v868_v43  ;;  %v3996_v5 = vpop.eup %3144  ;;  %2916 = vmatmul.mubr.msk.f32.gmra.mrb[38].mxu1 %vm661_vm1, %v3994_v24  ;;  %v709_v50 = vpop.xlane.xlu1 %708 }
 0x18c   :  { %v712_v10 = vpop.xlane.xlu0 %711  ;;  %3154 = vpow2.f32 %v944_v31  ;;  %v869_v42 = vsub.f32 %v3761_v48, %v709_v50  ;;  %2918 = vmatprep.mubr.msk.f32.mxu1 %vm661_vm1, %v3996_v5 }
 0x18d   :  { %v870_v49 = vsub.f32 %v3775_v55, %v712_v10  ;;  %3156 = vpow2.f32 %v946_v17 }
 0x18e   :  { %v4004_v63 = vpop.eup %3146  ;;  %v948_v33 = vmul.f32 1.442695, %v869_v42 }
 0x18f   :  { %v950_v8 = vmul.f32 1.442695, %v870_v49  ;;  %v4006_v56 = vpop.eup %3148  ;;  %2919 = vmatmul.mubr.msk.f32.gmra.mrb[40].mxu1 %vm661_vm1, %v4004_v63  ;;  %v715_v12 = vpop.xlane.xlu1 %714 }
 0x190   :  { %v718_v19 = vpop.xlane.xlu0 %717  ;;  %3158 = vpow2.f32 %v948_v33  ;;  %v871_v48 = vsub.f32 %v3773_v54, %v715_v12  ;;  %2921 = vmatprep.mubr.msk.f32.mxu1 %vm661_vm1, %v4006_v56 }
 0x191   :  { %v872_v55 = vsub.f32 %v3787_v61, %v718_v19  ;;  %3160 = vpow2.f32 %v950_v8 }
 0x192   :  { %v4014_v30 = vpop.eup %3150  ;;  %v952_v37 = vmul.f32 1.442695, %v871_v48 }
 0x193   :  { %v954_v57 = vmul.f32 1.442695, %v872_v55  ;;  %v4016_v18 = vpop.eup %3152  ;;  %2922 = vmatmul.mubr.msk.f32.gmra.mrb[42].mxu1 %vm661_vm1, %v4014_v30  ;;  %v721_v45 = vpop.xlane.xlu1 %720 }
 0x194   :  { %v724_v62 = vpop.xlane.xlu0 %723  ;;  %3162 = vpow2.f32 %v952_v37  ;;  %v873_v54 = vsub.f32 %v3785_v60, %v721_v45  ;;  %2924 = vmatprep.mubr.msk.f32.mxu1 %vm661_vm1, %v4016_v18 }
 0x195   :  { %v874_v61 = vsub.f32 %v3799_v3, %v724_v62  ;;  %3164 = vpow2.f32 %v954_v57 }
 0x196   :  { %v4024_v36 = vpop.eup %3154  ;;  %v956_v43 = vmul.f32 1.442695, %v873_v54  ;;  %v4700_v54 = vld [vmem:[#allocation4_spill] sm:$0xff] }
 0x197   :  { %v958_v31 = vmul.f32 1.442695, %v874_v61  ;;  %v4026_v17 = vpop.eup %3156  ;;  %2925 = vmatmul.mubr.msk.f32.gmra.mrb[44].mxu1 %vm661_vm1, %v4024_v36  ;;  %v727_v50 = vpop.xlane.xlu1 %726 }
 0x198   :  { %v730_v10 = vpop.xlane.xlu0 %729  ;;  %3166 = vpow2.f32 %v956_v43  ;;  %v875_v60 = vsub.f32 %v3797_v2, %v727_v50  ;;  %2927 = vmatprep.mubr.msk.f32.mxu1 %vm661_vm1, %v4026_v17 }
 0x199   :  { %v876_v3 = vsub.f32 %v3811_v11, %v730_v10  ;;  %3168 = vpow2.f32 %v958_v31 }
 0x19a   :  { %v4034_v42 = vpop.eup %3158  ;;  %v960_v49 = vmul.f32 1.442695, %v875_v60 }
 0x19b   :  { %v962_v33 = vmul.f32 1.442695, %v876_v3  ;;  %v4036_v8 = vpop.eup %3160  ;;  %2928 = vmatmul.mubr.msk.f32.gmra.mrb[46].mxu1 %vm661_vm1, %v4034_v42  ;;  %v733_v12 = vpop.xlane.xlu1 %732  ;;  %v4701_v3 = vld [vmem:[#allocation3_spill] sm:$0xff] }
 0x19c   :  { %v736_v19 = vpop.xlane.xlu0 %735  ;;  %3170 = vpow2.f32 %v960_v49  ;;  %v877_v2 = vsub.f32 %v3809_v9, %v733_v12  ;;  %2930 = vmatprep.mubr.msk.f32.mxu1 %vm661_vm1, %v4036_v8  ;;  %v4702_v49 = vld [vmem:[#allocation8_spill] sm:$0xff] }
 0x19d   :  { %v878_v11 = vsub.f32 %v3823_v27, %v736_v19  ;;  %3172 = vpow2.f32 %v962_v33 }
 0x19e   :  { %v4044_v48 = vpop.eup %3162  ;;  %v964_v55 = vmul.f32 1.442695, %v877_v2 }
 0x19f   :  { %v966_v37 = vmul.f32 1.442695, %v878_v11  ;;  %v4046_v57 = vpop.eup %3164  ;;  %2931 = vmatmul.mubr.msk.f32.gmra.mrb[48].mxu1 %vm661_vm1, %v4044_v48  ;;  %v739_v45 = vpop.xlane.xlu1 %738 }
 0x1a0   :  { %v742_v62 = vpop.xlane.xlu0 %741  ;;  %3174 = vpow2.f32 %v964_v55  ;;  %v879_v9 = vsub.f32 %v3821_v26, %v739_v45  ;;  %2933 = vmatprep.mubr.msk.f32.mxu1 %vm661_vm1, %v4046_v57  ;;  %v4703_v45 = vld [vmem:[#allocation7_spill] sm:$0xff] }
 0x1a1   :  { %v880_v27 = vsub.f32 %v4700_v54, %v742_v62  ;;  %3176 = vpow2.f32 %v966_v37 }
 0x1a2   :  { %v4054_v61 = vpop.eup %3166  ;;  %v968_v43 = vmul.f32 1.442695, %v879_v9  ;;  %v4704_v9 = vld [vmem:[#allocation11_spill] sm:$0xff] }
 0x1a3   :  { %v970_v31 = vmul.f32 1.442695, %v880_v27  ;;  %v4056_v50 = vpop.eup %3168  ;;  %2934 = vmatmul.mubr.msk.f32.gmra.mrb[50].mxu1 %vm661_vm1, %v4054_v61  ;;  %v745_v10 = vpop.xlane.xlu1 %744 }
 0x1a4   :  { %v748_v60 = vpop.xlane.xlu0 %747  ;;  %3178 = vpow2.f32 %v968_v43  ;;  %v881_v26 = vsub.f32 %v4701_v3, %v745_v10  ;;  %2936 = vmatprep.mubr.msk.f32.mxu1 %vm661_vm1, %v4056_v50 }
 0x1a5   :  { %v882_v33 = vsub.f32 %v4702_v49, %v748_v60  ;;  %3180 = vpow2.f32 %v970_v31  ;;  %v4705_v49 = vld [vmem:[#allocation2_spill] sm:$0xff] }
 0x1a6   :  { %v4064_v12 = vpop.eup %3170  ;;  %v972_v19 = vmul.f32 1.442695, %v881_v26 }
 0x1a7   :  { %v974_v2 = vmul.f32 1.442695, %v882_v33  ;;  %v4066_v11 = vpop.eup %3172  ;;  %2937 = vmatmul.mubr.msk.f32.gmra.mrb[52].mxu1 %vm661_vm1, %v4064_v12  ;;  %v751_v55 = vpop.xlane.xlu1 %750 }
 0x1a8   :  { %v754_v37 = vpop.xlane.xlu0 %753  ;;  %3182 = vpow2.f32 %v972_v19  ;;  %v883_v62 = vsub.f32 %v4703_v45, %v751_v55  ;;  %2939 = vmatprep.mubr.msk.f32.mxu1 %vm661_vm1, %v4066_v11 }
 0x1a9   :  { %v884_v54 = vsub.f32 %v4704_v9, %v754_v37  ;;  %3184 = vpow2.f32 %v974_v2 }
 0x1aa   :  { %v4074_v27 = vpop.eup %3174  ;;  %v976_v43 = vmul.f32 1.442695, %v883_v62 }
 0x1ab   :  { %v978_v31 = vmul.f32 1.442695, %v884_v54  ;;  %v4076_v10 = vpop.eup %3176  ;;  %2940 = vmatmul.mubr.msk.f32.gmra.mrb[54].mxu1 %vm661_vm1, %v4074_v27  ;;  %v757_v60 = vpop.xlane.xlu1 %756 }
 0x1ac   :  { %v760_v3 = vpop.xlane.xlu0 %759  ;;  %3186 = vpow2.f32 %v976_v43  ;;  %v885_v26 = vsub.f32 %v3857_v32, %v757_v60  ;;  %2942 = vmatprep.mubr.msk.f32.mxu1 %vm661_vm1, %v4076_v10 }
 0x1ad   :  { %v886_v33 = vsub.f32 %v4705_v49, %v760_v3  ;;  %3188 = vpow2.f32 %v978_v31 }
 0x1ae   :  { %v4084_v19 = vpop.eup %3178  ;;  %v980_v2 = vmul.f32 1.442695, %v885_v26 }
 0x1af   :  { %v982_v55 = vmul.f32 1.442695, %v886_v33  ;;  %v4086_v37 = vpop.eup %3180  ;;  %2943 = vmatmul.mubr.msk.f32.gmra.mrb[56].mxu1 %vm661_vm1, %v4084_v19  ;;  %v763_v45 = vpop.xlane.xlu1 %762 }
 0x1b0   :  { %v766_v62 = vpop.xlane.xlu0 %765  ;;  %3190 = vpow2.f32 %v980_v2  ;;  %v887_v32 = vsub.f32 %v3697_v16, %v763_v45  ;;  %2945 = vmatprep.mubr.msk.f32.mxu1 %vm661_vm1, %v4086_v37 }
 0x1b1   :  { %v888_v9 = vsub.f32 %v3711_v23, %v766_v62  ;;  %3192 = vpow2.f32 %v982_v55 }
 0x1b2   :  { %v4094_v54 = vpop.eup %3182  ;;  %v984_v43 = vmul.f32 1.442695, %v887_v32 }
 0x1b3   :  { %v986_v31 = vmul.f32 1.442695, %v888_v9  ;;  %v4096_v60 = vpop.eup %3184  ;;  %2946 = vmatmul.mubr.msk.f32.gmra.mrb[58].mxu1 %vm661_vm1, %v4094_v54  ;;  %v769_v3 = vpop.xlane.xlu1 %768 }
 0x1b4   :  { %v772_v26 = vpop.xlane.xlu0 %771  ;;  %3194 = vpow2.f32 %v984_v43  ;;  %v889_v16 = vsub.f32 %v3709_v22, %v769_v3  ;;  %2948 = vmatprep.mubr.msk.f32.mxu1 %vm661_vm1, %v4096_v60 }
 0x1b5   :  { %v890_v23 = vsub.f32 %v3723_v29, %v772_v26  ;;  %3196 = vpow2.f32 %v986_v31 }
 0x1b6   :  { %v4104_v49 = vpop.eup %3186  ;;  %v988_v33 = vmul.f32 1.442695, %v889_v16 }
 0x1b7   :  { %v990_v2 = vmul.f32 1.442695, %v890_v23  ;;  %v4106_v55 = vpop.eup %3188  ;;  %2949 = vmatmul.mubr.msk.f32.gmra.mrb[60].mxu1 %vm661_vm1, %v4104_v49  ;;  %v775_v45 = vpop.xlane.xlu1 %774 }
 0x1b8   :  { %v778_v62 = vpop.xlane.xlu0 %777  ;;  %3198 = vpow2.f32 %v988_v33  ;;  %v891_v22 = vsub.f32 %v3721_v28, %v775_v45  ;;  %2951 = vmatprep.mubr.msk.f32.mxu1 %vm661_vm1, %v4106_v55 }
 0x1b9   :  { %v892_v29 = vsub.f32 %v3735_v35, %v778_v62  ;;  %3200 = vpow2.f32 %v990_v2 }
 0x1ba   :  { %v4114_v32 = vpop.eup %3190  ;;  %v992_v9 = vmul.f32 1.442695, %v891_v22 }
 0x1bb   :  { %v994_v43 = vmul.f32 1.442695, %v892_v29  ;;  %v4116_v31 = vpop.eup %3192  ;;  %v781_v3 = vpop.xlane.xlu1 %780  ;;  %2952 = vmatmul.mubr.msk.f32.gmra.mrb[62].mxu1 %vm661_vm1, %v4114_v32 }
 0x1bc   :  { %v784_v26 = vpop.xlane.xlu0 %783  ;;  %3202 = vpow2.f32 %v992_v9  ;;  %v893_v28 = vsub.f32 %v3733_v34, %v781_v3  ;;  %2954 = vmatprep.mubr.msk.f32.mxu1 %vm661_vm1, %v4116_v31 }
 0x1bd   :  { %v894_v35 = vsub.f32 %v3747_v41, %v784_v26  ;;  %3204 = vpow2.f32 %v994_v43 }
 0x1be   :  { %v4124_v16 = vpop.eup %3194  ;;  %v996_v23 = vmul.f32 1.442695, %v893_v28 }
 0x1bf   :  { %v998_v33 = vmul.f32 1.442695, %v894_v35  ;;  %v4126_v2 = vpop.eup %3196  ;;  %v787_v45 = vpop.xlane.xlu1 %786  ;;  %2955 = vmatmul.mubr.msk.f32.gmra.mrb[64].mxu1 %vm661_vm1, %v4124_v16 }
 0x1c0   :  { %v790_v62 = vpop.xlane.xlu0 %789  ;;  %3206 = vpow2.f32 %v996_v23  ;;  %v895_v34 = vsub.f32 %v3745_v40, %v787_v45  ;;  %2957 = vmatprep.mubr.msk.f32.mxu1 %vm661_vm1, %v4126_v2 }
 0x1c1   :  { %v896_v41 = vsub.f32 %v3759_v47, %v790_v62  ;;  %3208 = vpow2.f32 %v998_v33 }
 0x1c2   :  { %v4134_v22 = vpop.eup %3198  ;;  %v1000_v29 = vmul.f32 1.442695, %v895_v34 }
 0x1c3   :  { %v1002_v9 = vmul.f32 1.442695, %v896_v41  ;;  %v4136_v43 = vpop.eup %3200  ;;  %v793_v3 = vpop.xlane.xlu1 %792  ;;  %2958 = vmatmul.mubr.msk.f32.gmra.mrb[66].mxu1 %vm661_vm1, %v4134_v22 }
 0x1c4   :  { %v796_v26 = vpop.xlane.xlu0 %795  ;;  %3210 = vpow2.f32 %v1000_v29  ;;  %v897_v40 = vsub.f32 %v3757_v46, %v793_v3  ;;  %2960 = vmatprep.mubr.msk.f32.mxu1 %vm661_vm1, %v4136_v43 }
 0x1c5   :  { %v898_v47 = vsub.f32 %v3771_v53, %v796_v26  ;;  %3212 = vpow2.f32 %v1002_v9 }
 0x1c6   :  { %v4144_v28 = vpop.eup %3202  ;;  %v1004_v35 = vmul.f32 1.442695, %v897_v40 }
 0x1c7   :  { %v1006_v23 = vmul.f32 1.442695, %v898_v47  ;;  %v4146_v33 = vpop.eup %3204  ;;  %v799_v45 = vpop.xlane.xlu1 %798  ;;  %2961 = vmatmul.mubr.msk.f32.gmra.mrb[68].mxu1 %vm661_vm1, %v4144_v28 }
 0x1c8   :  { %v802_v62 = vpop.xlane.xlu0 %801  ;;  %3214 = vpow2.f32 %v1004_v35  ;;  %v899_v46 = vsub.f32 %v3769_v52, %v799_v45  ;;  %2963 = vmatprep.mubr.msk.f32.mxu1 %vm661_vm1, %v4146_v33 }
 0x1c9   :  { %v900_v53 = vsub.f32 %v3783_v59, %v802_v62  ;;  %3216 = vpow2.f32 %v1006_v23 }
 0x1ca   :  { %v4154_v34 = vpop.eup %3206  ;;  %v1008_v41 = vmul.f32 1.442695, %v899_v46 }
 0x1cb   :  { %v1010_v29 = vmul.f32 1.442695, %v900_v53  ;;  %v4156_v9 = vpop.eup %3208  ;;  %v805_v3 = vpop.xlane.xlu1 %804  ;;  %2964 = vmatmul.mubr.msk.f32.gmra.mrb[70].mxu1 %vm661_vm1, %v4154_v34 }
 0x1cc   :  { %v808_v26 = vpop.xlane.xlu0 %807  ;;  %3218 = vpow2.f32 %v1008_v41  ;;  %v901_v52 = vsub.f32 %v3781_v58, %v805_v3  ;;  %2966 = vmatprep.mubr.msk.f32.mxu1 %vm661_vm1, %v4156_v9 }
 0x1cd   :  { %v902_v59 = vsub.f32 %v3795_v1, %v808_v26  ;;  %3220 = vpow2.f32 %v1010_v29 }
 0x1ce   :  { %v4164_v40 = vpop.eup %3210  ;;  %v1012_v47 = vmul.f32 1.442695, %v901_v52 }
 0x1cf   :  { %v1014_v35 = vmul.f32 1.442695, %v902_v59  ;;  %v4166_v23 = vpop.eup %3212  ;;  %v811_v45 = vpop.xlane.xlu1 %810  ;;  %2967 = vmatmul.mubr.msk.f32.gmra.mrb[72].mxu1 %vm661_vm1, %v4164_v40 }
 0x1d0   :  { %v814_v62 = vpop.xlane.xlu0 %813  ;;  %3222 = vpow2.f32 %v1012_v47  ;;  %v903_v58 = vsub.f32 %v3793_v0, %v811_v45  ;;  %2969 = vmatprep.mubr.msk.f32.mxu1 %vm661_vm1, %v4166_v23 }
 0x1d1   :  { %v904_v1 = vsub.f32 %v3807_v7, %v814_v62  ;;  %3224 = vpow2.f32 %v1014_v35 }
 0x1d2   :  { %v4174_v46 = vpop.eup %3214  ;;  %v1016_v53 = vmul.f32 1.442695, %v903_v58 }
 0x1d3   :  { %v1018_v41 = vmul.f32 1.442695, %v904_v1  ;;  %v4176_v29 = vpop.eup %3216  ;;  %v817_v3 = vpop.xlane.xlu1 %816  ;;  %2970 = vmatmul.mubr.msk.f32.gmra.mrb[74].mxu1 %vm661_vm1, %v4174_v46 }
 0x1d4   :  { %v820_v26 = vpop.xlane.xlu0 %819  ;;  %3226 = vpow2.f32 %v1016_v53  ;;  %v905_v0 = vsub.f32 %v3805_v6, %v817_v3  ;;  %2972 = vmatprep.mubr.msk.f32.mxu1 %vm661_vm1, %v4176_v29 }
 0x1d5   :  { %v906_v7 = vsub.f32 %v3819_v21, %v820_v26  ;;  %3228 = vpow2.f32 %v1018_v41 }
 0x1d6   :  { %v4184_v52 = vpop.eup %3218  ;;  %v1020_v59 = vmul.f32 1.442695, %v905_v0  ;;  %v4706_v0 = vld [vmem:[#allocation6_spill] sm:$0xff] }
 0x1d7   :  { %v1022_v47 = vmul.f32 1.442695, %v906_v7  ;;  %v4186_v35 = vpop.eup %3220  ;;  %v823_v45 = vpop.xlane.xlu1 %822  ;;  %2973 = vmatmul.mubr.msk.f32.gmra.mrb[76].mxu1 %vm661_vm1, %v4184_v52 }
 0x1d8   :  { %v826_v62 = vpop.xlane.xlu0 %825  ;;  %3230 = vpow2.f32 %v1020_v59  ;;  %v907_v6 = vsub.f32 %v3817_v20, %v823_v45  ;;  %2975 = vmatprep.mubr.msk.f32.mxu1 %vm661_vm1, %v4186_v35 }
 0x1d9   :  { %v908_v21 = vsub.f32 %v3831_v39, %v826_v62  ;;  %3232 = vpow2.f32 %v1022_v47 }
 0x1da   :  { %v4194_v58 = vpop.eup %3222  ;;  %v1024_v1 = vmul.f32 1.442695, %v907_v6 }
 0x1db   :  { %v1026_v53 = vmul.f32 1.442695, %v908_v21  ;;  %v4196_v41 = vpop.eup %3224  ;;  %v829_v3 = vpop.xlane.xlu1 %828  ;;  %2976 = vmatmul.mubr.msk.f32.gmra.mrb[78].mxu1 %vm661_vm1, %v4194_v58  ;;  %v4709_v21 = vld [vmem:[#allocation5_spill] sm:$0xff] }
 0x1dc   :  { %v832_v26 = vpop.xlane.xlu0 %831  ;;  %3234 = vpow2.f32 %v1024_v1  ;;  %v909_v20 = vsub.f32 %v3829_v38, %v829_v3  ;;  %2978 = vmatprep.mubr.msk.f32.mxu1 %vm661_vm1, %v4196_v41  ;;  %v4710_v1 = vld [vmem:[#allocation10_spill] sm:$0xff] }
 0x1dd   :  { %v910_v39 = vsub.f32 %v4706_v0, %v832_v26  ;;  %3236 = vpow2.f32 %v1026_v53 }
 0x1de   :  { %v4204_v7 = vpop.eup %3226  ;;  %v1028_v59 = vmul.f32 1.442695, %v909_v20 }
 0x1df   :  { %4707 = vst [vmem:[#allocation4_spill] sm:$0xff] %v4204_v7  ;;  %v1030_v47 = vmul.f32 1.442695, %v910_v39  ;;  %v4206_v45 = vpop.eup %3228  ;;  %v835_v62 = vpop.xlane.xlu1 %834  ;;  %2979 = vmatmul.mubr.msk.f32.gmra.mrb[80].mxu1 %vm661_vm1, %v4204_v7 }
 0x1e0   :  { %4708 = vst [vmem:[#allocation3_spill] sm:$0xff] %v4206_v45  ;;  %v838_v6 = vpop.xlane.xlu0 %837  ;;  %3238 = vpow2.f32 %v1028_v59  ;;  %v911_v38 = vsub.f32 %v4709_v21, %v835_v62  ;;  %2981 = vmatprep.mubr.msk.f32.mxu1 %vm661_vm1, %v4206_v45  ;;  %v4713_v59 = vld [vmem:[#allocation9_spill] sm:$0xff] }
 0x1e1   :  { %v912_v3 = vsub.f32 %v4710_v1, %v838_v6  ;;  %3240 = vpow2.f32 %v1030_v47  ;;  %v4714_v21 = vld [vmem:[#allocation13_spill] sm:$0xff] }
 0x1e2   :  { %v4214_v53 = vpop.eup %3230  ;;  %v1032_v26 = vmul.f32 1.442695, %v911_v38 }
 0x1e3   :  { %4711 = vst [vmem:[#allocation8_spill] sm:$0xff] %v4214_v53  ;;  %v1034_v20 = vmul.f32 1.442695, %v912_v3  ;;  %v4216_v0 = vpop.eup %3232  ;;  %v841_v39 = vpop.xlane.xlu1 %840  ;;  %2982 = vmatmul.mubr.msk.f32.gmra.mrb[82].mxu1 %vm661_vm1, %v4214_v53 }
 0x1e4   :  { %4712 = vst [vmem:[#allocation7_spill] sm:$0xff] %v4216_v0  ;;  %v844_v7 = vpop.xlane.xlu0 %843  ;;  %3242 = vpow2.f32 %v1032_v26  ;;  %v913_v62 = vsub.f32 %v4713_v59, %v841_v39  ;;  %2984 = vmatprep.mubr.msk.f32.mxu1 %vm661_vm1, %v4216_v0  ;;  %v4716_v26 = vld [vmem:[#allocation12_spill] sm:$0xff]  ;;  %v4717_v59 = vld [vmem:[#allocation15_spill] sm:$0xff] }
 0x1e5   :  { %v914_v6 = vsub.f32 %v4714_v21, %v844_v7  ;;  %3244 = vpow2.f32 %v1034_v20 }
 0x1e6   :  { %v4224_v47 = vpop.eup %3234  ;;  %v1036_v38 = vmul.f32 1.442695, %v913_v62 }
 0x1e7   :  { %4715 = vst [vmem:[#allocation11_spill] sm:$0xff] %v4224_v47  ;;  %v1038_v1 = vmul.f32 1.442695, %v914_v6  ;;  %v4226_v3 = vpop.eup %3236  ;;  %v847_v45 = vpop.xlane.xlu1 %846  ;;  %2985 = vmatmul.mubr.msk.f32.gmra.mrb[84].mxu1 %vm661_vm1, %v4224_v47 }
 0x1e8   :  { %v850_v53 = vpop.xlane.xlu0 %849  ;;  %3246 = vpow2.f32 %v1036_v38  ;;  %v915_v39 = vsub.f32 %v4716_v26, %v847_v45  ;;  %2987 = vmatprep.mubr.msk.f32.mxu1 %vm661_vm1, %v4226_v3  ;;  %v4718_v38 = vld [vmem:[#allocation14_spill] sm:$0xff] }
 0x1e9   :  { %v916_v7 = vsub.f32 %v4717_v59, %v850_v53  ;;  %3248 = vpow2.f32 %v1038_v1 }
 0x1ea   :  { %v4234_v20 = vpop.eup %3238  ;;  %v1040_v62 = vmul.f32 1.442695, %v915_v39 }
 0x1eb   :  { %v1042_v21 = vmul.f32 1.442695, %v916_v7  ;;  %v4236_v6 = vpop.eup %3240  ;;  %v853_v0 = vpop.xlane.xlu1 %852  ;;  %2988 = vmatmul.mubr.msk.f32.gmra.mrb[86].mxu1 %vm661_vm1, %v4234_v20 }
 0x1ec   :  { %3250 = vpow2.f32 %v1040_v62  ;;  %v917_v47 = vsub.f32 %v4718_v38, %v853_v0  ;;  %2990 = vmatprep.mubr.msk.f32.mxu1 %vm661_vm1, %v4236_v6 }
 0x1ed   :  { %3252 = vpow2.f32 %v1042_v21 }
 0x1ee   :  { %v4243_v45 = vpop.eup %3242  ;;  %v1044_v53 = vmul.f32 1.442695, %v917_v47 }
 0x1ef   :  { %4719 = vst [vmem:[#allocation2_spill] sm:$0xff] %v4243_v45  ;;  %v4245_v1 = vpop.eup %3244  ;;  %2991 = vmatmul.mubr.msk.f32.gmra.mrb[88].mxu1 %vm661_vm1, %v4243_v45 }
 0x1f0   :  { %4720 = vst [vmem:[#allocation6_spill] sm:$0xff] %v4245_v1  ;;  %3254 = vpow2.f32 %v1044_v53  ;;  %2993 = vmatprep.mubr.msk.f32.mxu1 %vm661_vm1, %v4245_v1 }
 0x1f2   :  { %v4251_v26 = vpop.eup %3246 }
 0x1f3   :  { %4721 = vst [vmem:[#allocation5_spill] sm:$0xff] %v4251_v26  ;;  %v4253_v39 = vpop.eup %3248  ;;  %2994 = vmatmul.mubr.msk.f32.gmra.mrb[90].mxu1 %vm661_vm1, %v4251_v26 }
 0x1f4   :  { %4722 = vst [vmem:[#allocation10_spill] sm:$0xff] %v4253_v39  ;;  %2996 = vmatprep.mubr.msk.f32.mxu1 %vm661_vm1, %v4253_v39 }
 0x1f6   :  { %v4259_v0 = vpop.eup %3250 }
 0x1f7   :  { %4723 = vst [vmem:[#allocation9_spill] sm:$0xff] %v4259_v0  ;;  %v4261_v47 = vpop.eup %3252  ;;  %2997 = vmatmul.mubr.msk.f32.gmra.mrb[92].mxu1 %vm661_vm1, %v4259_v0 }
 0x1f8   :  { %4724 = vst [vmem:[#allocation13_spill] sm:$0xff] %v4261_v47  ;;  %2999 = vmatprep.mubr.msk.f32.mxu1 %vm661_vm1, %v4261_v47 }
 0x1fa   :  { %v4267_v59 = vpop.eup %3254 }
 0x1fb   :  { %4725 = vst [vmem:[#allocation12_spill] sm:$0xff] %v4267_v59  ;;  %3000 = vmatmul.mubr.msk.f32.gmra.mrb[94].mxu1 %vm661_vm1, %v4267_v59 }
 0x252   :  { %v2908_v7 = vpop.f32.mrb[32].mxu1 }
 0x253   :  { %3256 = vrcp.f32 %v2908_v7  ;;  %v1308_v62 = vpop.f32.mrb[33].mxu1 }
 0x254   :  { %3258 = vrcp.f32 %v1308_v62 }
 0x256   :  { %v2911_v21 = vpop.f32.mrb[34].mxu1 }
 0x257   :  { %3260 = vrcp.f32 %v2911_v21  ;;  %v1318_v38 = vpop.f32.mrb[35].mxu1 }
 0x258   :  { %3262 = vrcp.f32 %v1318_v38 }
 0x25a   :  { %v2914_v53 = vpop.f32.mrb[36].mxu1 }
 0x25b   :  { %3264 = vrcp.f32 %v2914_v53  ;;  %v1328_v39 = vpop.f32.mrb[37].mxu1 }
 0x25c   :  { %3266 = vrcp.f32 %v1328_v39 }
 0x25d   :  { %v3257_v0 = vpop.eup %3256 }
 0x25e   :  { %v3259_v26 = vpop.eup %3258  ;;  %v2917_v47 = vpop.f32.mrb[38].mxu1  ;;  %v1692_v59 = vmul.f32 %v3257_v0, %v3964_v51 }
 0x25f   :  { %3268 = vrcp.f32 %v2917_v47  ;;  %v1338_v1 = vpop.f32.mrb[39].mxu1  ;;  %v1691_v45 = vmul.f32 %v3259_v26, %v3946_v13 }
 0x260   :  { %3270 = vrcp.f32 %v1338_v1 }
 0x261   :  { %v3261_v7 = vpop.eup %3260  ;;  %3010 = vmatprep.mubr.msk.f32.mxu0 %vm661_vm1, %v1691_v45 }
 0x262   :  { %v3263_v62 = vpop.eup %3262  ;;  %v2920_v21 = vpop.f32.mrb[40].mxu1  ;;  %3011 = vmatmul.mubr.msk.f32.vlgmr.msra.gmra.mrb[32].mxu0 %vm661_vm1, %v1692_v59  ;;  %v1694_v47 = vmul.f32 %v3261_v7, %v3974_v15 }
 0x263   :  { %3272 = vrcp.f32 %v2920_v21  ;;  %v1348_v38 = vpop.f32.mrb[41].mxu1  ;;  %v1693_v39 = vmul.f32 %v3263_v62, %v3966_v4 }
 0x264   :  { %3274 = vrcp.f32 %v1348_v38 }
 0x265   :  { %v3265_v53 = vpop.eup %3264  ;;  %3013 = vmatprep.mubr.msk.f32.mxu0 %vm661_vm1, %v1693_v39 }
 0x266   :  { %v3267_v13 = vpop.eup %3266  ;;  %v2923_v51 = vpop.f32.mrb[42].mxu1  ;;  %3014 = vmatmul.mubr.msk.f32.gmra.mrb[34].mxu0 %vm661_vm1, %v1694_v47  ;;  %v1696_v26 = vmul.f32 %v3265_v53, %v3984_v44 }
 0x267   :  { %3276 = vrcp.f32 %v2923_v51  ;;  %v1358_v45 = vpop.f32.mrb[43].mxu1  ;;  %v1695_v1 = vmul.f32 %v3267_v13, %v3976_v14 }
 0x268   :  { %3278 = vrcp.f32 %v1358_v45 }
 0x269   :  { %v3269_v0 = vpop.eup %3268  ;;  %3016 = vmatprep.mubr.msk.f32.mxu0 %vm661_vm1, %v1695_v1 }
 0x26a   :  { %v3271_v4 = vpop.eup %3270  ;;  %v2926_v59 = vpop.f32.mrb[44].mxu1  ;;  %3017 = vmatmul.mubr.msk.f32.gmra.mrb[36].mxu0 %vm661_vm1, %v1696_v26  ;;  %v1698_v62 = vmul.f32 %v3269_v0, %v3994_v24 }
 0x26b   :  { %3280 = vrcp.f32 %v2926_v59  ;;  %v1368_v15 = vpop.f32.mrb[45].mxu1  ;;  %v1697_v7 = vmul.f32 %v3271_v4, %v3986_v25 }
 0x26c   :  { %3282 = vrcp.f32 %v1368_v15 }
 0x26d   :  { %v3273_v21 = vpop.eup %3272  ;;  %3019 = vmatprep.mubr.msk.f32.mxu0 %vm661_vm1, %v1697_v7 }
 0x26e   :  { %v3275_v14 = vpop.eup %3274  ;;  %v2929_v38 = vpop.f32.mrb[46].mxu1  ;;  %3020 = vmatmul.mubr.msk.f32.gmra.mrb[38].mxu0 %vm661_vm1, %v1698_v62  ;;  %v1700_v47 = vmul.f32 %v3273_v21, %v4004_v63 }
 0x26f   :  { %3284 = vrcp.f32 %v2929_v38  ;;  %v1378_v44 = vpop.f32.mrb[47].mxu1  ;;  %v1699_v39 = vmul.f32 %v3275_v14, %v3996_v5 }
 0x270   :  { %3286 = vrcp.f32 %v1378_v44 }
 0x271   :  { %v3277_v53 = vpop.eup %3276  ;;  %3022 = vmatprep.mubr.msk.f32.mxu0 %vm661_vm1, %v1699_v39 }
 0x272   :  { %v3279_v25 = vpop.eup %3278  ;;  %v2932_v13 = vpop.f32.mrb[48].mxu1  ;;  %3023 = vmatmul.mubr.msk.f32.gmra.mrb[40].mxu0 %vm661_vm1, %v1700_v47  ;;  %v1702_v45 = vmul.f32 %v3277_v53, %v4014_v30 }
 0x273   :  { %3288 = vrcp.f32 %v2932_v13  ;;  %v1388_v24 = vpop.f32.mrb[49].mxu1  ;;  %v1701_v51 = vmul.f32 %v3279_v25, %v4006_v56 }
 0x274   :  { %3290 = vrcp.f32 %v1388_v24 }
 0x275   :  { %v3281_v1 = vpop.eup %3280  ;;  %3025 = vmatprep.mubr.msk.f32.mxu0 %vm661_vm1, %v1701_v51 }
 0x276   :  { %v3283_v5 = vpop.eup %3282  ;;  %v2935_v26 = vpop.f32.mrb[50].mxu1  ;;  %3026 = vmatmul.mubr.msk.f32.gmra.mrb[42].mxu0 %vm661_vm1, %v1702_v45  ;;  %v1704_v4 = vmul.f32 %v3281_v1, %v4024_v36 }
 0x277   :  { %3292 = vrcp.f32 %v2935_v26  ;;  %v1398_v63 = vpop.f32.mrb[51].mxu1  ;;  %v1703_v0 = vmul.f32 %v3283_v5, %v4016_v18 }
 0x278   :  { %3294 = vrcp.f32 %v1398_v63 }
 0x279   :  { %v3285_v59 = vpop.eup %3284  ;;  %3028 = vmatprep.mubr.msk.f32.mxu0 %vm661_vm1, %v1703_v0 }
 0x27a   :  { %v3287_v56 = vpop.eup %3286  ;;  %v2938_v15 = vpop.f32.mrb[52].mxu1  ;;  %3029 = vmatmul.mubr.msk.f32.gmra.mrb[44].mxu0 %vm661_vm1, %v1704_v4  ;;  %v1706_v62 = vmul.f32 %v3285_v59, %v4034_v42 }
 0x27b   :  { %3296 = vrcp.f32 %v2938_v15  ;;  %v1408_v30 = vpop.f32.mrb[53].mxu1  ;;  %v1705_v7 = vmul.f32 %v3287_v56, %v4026_v17 }
 0x27c   :  { %3298 = vrcp.f32 %v1408_v30 }
 0x27d   :  { %v3289_v21 = vpop.eup %3288  ;;  %3031 = vmatprep.mubr.msk.f32.mxu0 %vm661_vm1, %v1705_v7 }
 0x27e   :  { %v3291_v18 = vpop.eup %3290  ;;  %v2941_v14 = vpop.f32.mrb[54].mxu1  ;;  %3032 = vmatmul.mubr.msk.f32.gmra.mrb[46].mxu0 %vm661_vm1, %v1706_v62  ;;  %v1708_v44 = vmul.f32 %v3289_v21, %v4044_v48 }
 0x27f   :  { %3300 = vrcp.f32 %v2941_v14  ;;  %v1418_v36 = vpop.f32.mrb[55].mxu1  ;;  %v1707_v38 = vmul.f32 %v3291_v18, %v4036_v8 }
 0x280   :  { %3302 = vrcp.f32 %v1418_v36 }
 0x281   :  { %v3293_v39 = vpop.eup %3292  ;;  %3034 = vmatprep.mubr.msk.f32.mxu0 %vm661_vm1, %v1707_v38 }
 0x282   :  { %v3295_v17 = vpop.eup %3294  ;;  %v2944_v47 = vpop.f32.mrb[56].mxu1  ;;  %3035 = vmatmul.mubr.msk.f32.gmra.mrb[48].mxu0 %vm661_vm1, %v1708_v44  ;;  %v1710_v25 = vmul.f32 %v3293_v39, %v4054_v61 }
 0x283   :  { %3304 = vrcp.f32 %v2944_v47  ;;  %v1428_v42 = vpop.f32.mrb[57].mxu1  ;;  %v1709_v53 = vmul.f32 %v3295_v17, %v4046_v57 }
 0x284   :  { %3306 = vrcp.f32 %v1428_v42 }
 0x285   :  { %v3297_v13 = vpop.eup %3296  ;;  %3037 = vmatprep.mubr.msk.f32.mxu0 %vm661_vm1, %v1709_v53 }
 0x286   :  { %v3299_v8 = vpop.eup %3298  ;;  %v2947_v24 = vpop.f32.mrb[58].mxu1  ;;  %3038 = vmatmul.mubr.msk.f32.gmra.mrb[50].mxu0 %vm661_vm1, %v1710_v25  ;;  %v1712_v45 = vmul.f32 %v3297_v13, %v4064_v12 }
 0x287   :  { %3308 = vrcp.f32 %v2947_v24  ;;  %v1438_v48 = vpop.f32.mrb[59].mxu1  ;;  %v1711_v51 = vmul.f32 %v3299_v8, %v4056_v50 }
 0x288   :  { %3310 = vrcp.f32 %v1438_v48 }
 0x289   :  { %v3301_v1 = vpop.eup %3300  ;;  %3040 = vmatprep.mubr.msk.f32.mxu0 %vm661_vm1, %v1711_v51 }
 0x28a   :  { %v3303_v57 = vpop.eup %3302  ;;  %v2950_v5 = vpop.f32.mrb[60].mxu1  ;;  %3041 = vmatmul.mubr.msk.f32.gmra.mrb[52].mxu0 %vm661_vm1, %v1712_v45  ;;  %v1714_v63 = vmul.f32 %v3301_v1, %v4074_v27 }
 0x28b   :  { %3312 = vrcp.f32 %v2950_v5  ;;  %v1448_v61 = vpop.f32.mrb[61].mxu1  ;;  %v1713_v26 = vmul.f32 %v3303_v57, %v4066_v11 }
 0x28c   :  { %3314 = vrcp.f32 %v1448_v61 }
 0x28d   :  { %v3305_v0 = vpop.eup %3304  ;;  %3043 = vmatprep.mubr.msk.f32.mxu0 %vm661_vm1, %v1713_v26 }
 0x28e   :  { %v3307_v50 = vpop.eup %3306  ;;  %v2953_v4 = vpop.f32.mrb[62].mxu1  ;;  %3044 = vmatmul.mubr.msk.f32.gmra.mrb[54].mxu0 %vm661_vm1, %v1714_v63  ;;  %v1716_v56 = vmul.f32 %v3305_v0, %v4084_v19 }
 0x28f   :  { %3316 = vrcp.f32 %v2953_v4  ;;  %v1458_v12 = vpop.f32.mrb[63].mxu1  ;;  %v1715_v59 = vmul.f32 %v3307_v50, %v4076_v10 }
 0x290   :  { %3318 = vrcp.f32 %v1458_v12 }
 0x291   :  { %v3309_v15 = vpop.eup %3308  ;;  %3046 = vmatprep.mubr.msk.f32.mxu0 %vm661_vm1, %v1715_v59 }
 0x292   :  { %v3311_v11 = vpop.eup %3310  ;;  %v2956_v30 = vpop.f32.mrb[64].mxu1  ;;  %3047 = vmatmul.mubr.msk.f32.gmra.mrb[56].mxu0 %vm661_vm1, %v1716_v56  ;;  %v1718_v62 = vmul.f32 %v3309_v15, %v4094_v54 }
 0x293   :  { %3320 = vrcp.f32 %v2956_v30  ;;  %v1468_v27 = vpop.f32.mrb[65].mxu1  ;;  %v1717_v7 = vmul.f32 %v3311_v11, %v4086_v37 }
 0x294   :  { %3322 = vrcp.f32 %v1468_v27 }
 0x295   :  { %v3313_v21 = vpop.eup %3312  ;;  %3049 = vmatprep.mubr.msk.f32.mxu0 %vm661_vm1, %v1717_v7 }
 0x296   :  { %v3315_v10 = vpop.eup %3314  ;;  %v2959_v18 = vpop.f32.mrb[66].mxu1  ;;  %3050 = vmatmul.mubr.msk.f32.gmra.mrb[58].mxu0 %vm661_vm1, %v1718_v62  ;;  %v1720_v36 = vmul.f32 %v3313_v21, %v4104_v49 }
 0x297   :  { %3324 = vrcp.f32 %v2959_v18  ;;  %v1478_v19 = vpop.f32.mrb[67].mxu1  ;;  %v1719_v14 = vmul.f32 %v3315_v10, %v4096_v60 }
 0x298   :  { %3326 = vrcp.f32 %v1478_v19 }
 0x299   :  { %v3317_v38 = vpop.eup %3316  ;;  %3052 = vmatprep.mubr.msk.f32.mxu0 %vm661_vm1, %v1719_v14 }
 0x29a   :  { %v3319_v37 = vpop.eup %3318  ;;  %v2962_v44 = vpop.f32.mrb[68].mxu1  ;;  %3053 = vmatmul.mubr.msk.f32.gmra.mrb[60].mxu0 %vm661_vm1, %v1720_v36  ;;  %v1722_v17 = vmul.f32 %v3317_v38, %v4114_v32 }
 0x29b   :  { %3328 = vrcp.f32 %v2962_v44  ;;  %v1488_v54 = vpop.f32.mrb[69].mxu1  ;;  %v1721_v39 = vmul.f32 %v3319_v37, %v4106_v55  ;;  %v4726_v37 = vld [vmem:[#allocation4_spill] sm:$0xff] }
 0x29c   :  { %3330 = vrcp.f32 %v1488_v54 }
 0x29d   :  { %v3321_v47 = vpop.eup %3320  ;;  %3055 = vmatprep.mubr.msk.f32.mxu0 %vm661_vm1, %v1721_v39 }
 0x29e   :  { %v3323_v60 = vpop.eup %3322  ;;  %v2965_v42 = vpop.f32.mrb[70].mxu1  ;;  %3056 = vmatmul.mubr.msk.f32.gmra.mrb[62].mxu0 %vm661_vm1, %v1722_v17  ;;  %v1724_v25 = vmul.f32 %v3321_v47, %v4124_v16  ;;  %v4727_v17 = vld [vmem:[#allocation3_spill] sm:$0xff] }
 0x29f   :  { %3332 = vrcp.f32 %v2965_v42  ;;  %v1498_v49 = vpop.f32.mrb[71].mxu1  ;;  %v1723_v53 = vmul.f32 %v3323_v60, %v4116_v31  ;;  %v4728_v60 = vld [vmem:[#allocation8_spill] sm:$0xff] }
 0x2a0   :  { %3334 = vrcp.f32 %v1498_v49 }
 0x2a1   :  { %v3325_v13 = vpop.eup %3324  ;;  %3058 = vmatprep.mubr.msk.f32.mxu0 %vm661_vm1, %v1723_v53 }
 0x2a2   :  { %v3327_v55 = vpop.eup %3326  ;;  %v2968_v8 = vpop.f32.mrb[72].mxu1  ;;  %3059 = vmatmul.mubr.msk.f32.gmra.mrb[64].mxu0 %vm661_vm1, %v1724_v25  ;;  %v1726_v48 = vmul.f32 %v3325_v13, %v4134_v22  ;;  %v4729_v13 = vld [vmem:[#allocation7_spill] sm:$0xff] }
 0x2a3   :  { %3336 = vrcp.f32 %v2968_v8  ;;  %v1508_v32 = vpop.f32.mrb[73].mxu1  ;;  %v1725_v24 = vmul.f32 %v3327_v55, %v4126_v2  ;;  %v4730_v8 = vld [vmem:[#allocation11_spill] sm:$0xff] }
 0x2a4   :  { %3338 = vrcp.f32 %v1508_v32 }
 0x2a5   :  { %v3329_v51 = vpop.eup %3328  ;;  %3061 = vmatprep.mubr.msk.f32.mxu0 %vm661_vm1, %v1725_v24 }
 0x2a6   :  { %v3331_v31 = vpop.eup %3330  ;;  %v2971_v45 = vpop.f32.mrb[74].mxu1  ;;  %3062 = vmatmul.mubr.msk.f32.gmra.mrb[66].mxu0 %vm661_vm1, %v1726_v48  ;;  %v1728_v57 = vmul.f32 %v3329_v51, %v4144_v28 }
 0x2a7   :  { %3340 = vrcp.f32 %v2971_v45  ;;  %v1518_v16 = vpop.f32.mrb[75].mxu1  ;;  %v1727_v1 = vmul.f32 %v3331_v31, %v4136_v43 }
 0x2a8   :  { %3342 = vrcp.f32 %v1518_v16 }
 0x2a9   :  { %v3333_v5 = vpop.eup %3332  ;;  %3064 = vmatprep.mubr.msk.f32.mxu0 %vm661_vm1, %v1727_v1 }
 0x2aa   :  { %v3335_v2 = vpop.eup %3334  ;;  %v2974_v61 = vpop.f32.mrb[76].mxu1  ;;  %3065 = vmatmul.mubr.msk.f32.gmra.mrb[68].mxu0 %vm661_vm1, %v1728_v57  ;;  %v1730_v63 = vmul.f32 %v3333_v5, %v4154_v34 }
 0x2ab   :  { %3344 = vrcp.f32 %v2974_v61  ;;  %v1528_v22 = vpop.f32.mrb[77].mxu1  ;;  %v1729_v26 = vmul.f32 %v3335_v2, %v4146_v33 }
 0x2ac   :  { %3346 = vrcp.f32 %v1528_v22  ;;  %v4731_v22 = vld [vmem:[#allocation2_spill] sm:$0xff] }
 0x2ad   :  { %v3337_v0 = vpop.eup %3336  ;;  %3067 = vmatprep.mubr.msk.f32.mxu0 %vm661_vm1, %v1729_v26 }
 0x2ae   :  { %v3339_v43 = vpop.eup %3338  ;;  %v2977_v50 = vpop.f32.mrb[78].mxu1  ;;  %3068 = vmatmul.mubr.msk.f32.gmra.mrb[70].mxu0 %vm661_vm1, %v1730_v63  ;;  %v1732_v12 = vmul.f32 %v3337_v0, %v4164_v40 }
 0x2af   :  { %3348 = vrcp.f32 %v2977_v50  ;;  %v1538_v28 = vpop.f32.mrb[79].mxu1  ;;  %v1731_v4 = vmul.f32 %v3339_v43, %v4156_v9  ;;  %v4733_v43 = vld [vmem:[#allocation5_spill] sm:$0xff] }
 0x2b0   :  { %3350 = vrcp.f32 %v1538_v28 }
 0x2b1   :  { %v3341_v59 = vpop.eup %3340  ;;  %3070 = vmatprep.mubr.msk.f32.mxu0 %vm661_vm1, %v1731_v4 }
 0x2b2   :  { %v3343_v33 = vpop.eup %3342  ;;  %v2980_v56 = vpop.f32.mrb[80].mxu1  ;;  %3071 = vmatmul.mubr.msk.f32.gmra.mrb[72].mxu0 %vm661_vm1, %v1732_v12  ;;  %v1734_v11 = vmul.f32 %v3341_v59, %v4174_v46  ;;  %v4735_v59 = vld [vmem:[#allocation9_spill] sm:$0xff] }
 0x2b3   :  { %3352 = vrcp.f32 %v2980_v56  ;;  %v1548_v34 = vpop.f32.mrb[81].mxu1  ;;  %v1733_v15 = vmul.f32 %v3343_v33, %v4166_v23 }
 0x2b4   :  { %3354 = vrcp.f32 %v1548_v34 }
 0x2b5   :  { %v3345_v30 = vpop.eup %3344  ;;  %3073 = vmatprep.mubr.msk.f32.mxu0 %vm661_vm1, %v1733_v15  ;;  %v4736_v15 = vld [vmem:[#allocation13_spill] sm:$0xff] }
 0x2b6   :  { %v3347_v9 = vpop.eup %3346  ;;  %v2983_v27 = vpop.f32.mrb[82].mxu1  ;;  %3074 = vmatmul.mubr.msk.f32.gmra.mrb[74].mxu0 %vm661_vm1, %v1734_v11  ;;  %v1736_v62 = vmul.f32 %v3345_v30, %v4184_v52  ;;  %v4737_v30 = vld [vmem:[#allocation12_spill] sm:$0xff] }
 0x2b7   :  { %3356 = vrcp.f32 %v2983_v27  ;;  %v1558_v40 = vpop.f32.mrb[83].mxu1  ;;  %v1735_v7 = vmul.f32 %v3347_v9, %v4176_v29 }
 0x2b8   :  { %3358 = vrcp.f32 %v1558_v40 }
 0x2b9   :  { %v3349_v21 = vpop.eup %3348  ;;  %3076 = vmatprep.mubr.msk.f32.mxu0 %vm661_vm1, %v1735_v7 }
 0x2ba   :  { %v3351_v23 = vpop.eup %3350  ;;  %v2986_v10 = vpop.f32.mrb[84].mxu1  ;;  %3077 = vmatmul.mubr.msk.f32.gmra.mrb[76].mxu0 %vm661_vm1, %v1736_v62  ;;  %v1738_v19 = vmul.f32 %v3349_v21, %v4194_v58 }
 0x2bb   :  { %3360 = vrcp.f32 %v2986_v10  ;;  %v1568_v46 = vpop.f32.mrb[85].mxu1  ;;  %v1737_v18 = vmul.f32 %v3351_v23, %v4186_v35 }
 0x2bc   :  { %3362 = vrcp.f32 %v1568_v46 }
 0x2bd   :  { %v3353_v14 = vpop.eup %3352  ;;  %3079 = vmatprep.mubr.msk.f32.mxu0 %vm661_vm1, %v1737_v18 }
 0x2be   :  { %v3355_v29 = vpop.eup %3354  ;;  %v2989_v36 = vpop.f32.mrb[86].mxu1  ;;  %3080 = vmatmul.mubr.msk.f32.gmra.mrb[78].mxu0 %vm661_vm1, %v1738_v19  ;;  %v1740_v44 = vmul.f32 %v3353_v14, %v4726_v37 }
 0x2bf   :  { %3364 = vrcp.f32 %v2989_v36  ;;  %v1578_v52 = vpop.f32.mrb[87].mxu1  ;;  %v1739_v38 = vmul.f32 %v3355_v29, %v4196_v41 }
 0x2c0   :  { %3366 = vrcp.f32 %v1578_v52 }
 0x2c1   :  { %v3357_v54 = vpop.eup %3356  ;;  %3082 = vmatprep.mubr.msk.f32.mxu0 %vm661_vm1, %v1739_v38 }
 0x2c2   :  { %v3359_v35 = vpop.eup %3358  ;;  %v2992_v39 = vpop.f32.mrb[88].mxu1  ;;  %3083 = vmatmul.mubr.msk.f32.gmra.mrb[80].mxu0 %vm661_vm1, %v1740_v44  ;;  %v1742_v42 = vmul.f32 %v3357_v54, %v4728_v60 }
 0x2c3   :  { %3368 = vrcp.f32 %v2992_v39  ;;  %v1588_v58 = vpop.f32.mrb[89].mxu1  ;;  %v1741_v47 = vmul.f32 %v3359_v35, %v4727_v17 }
 0x2c4   :  { %3370 = vrcp.f32 %v1588_v58 }
 0x2c5   :  { %v3361_v49 = vpop.eup %3360  ;;  %3085 = vmatprep.mubr.msk.f32.mxu0 %vm661_vm1, %v1741_v47 }
 0x2c6   :  { %v3363_v41 = vpop.eup %3362  ;;  %v2995_v53 = vpop.f32.mrb[90].mxu1  ;;  %3086 = vmatmul.mubr.msk.f32.gmra.mrb[82].mxu0 %vm661_vm1, %v1742_v42  ;;  %v1744_v32 = vmul.f32 %v3361_v49, %v4730_v8 }
 0x2c7   :  { %3372 = vrcp.f32 %v2995_v53  ;;  %v1598_v25 = vpop.f32.mrb[91].mxu1  ;;  %v1743_v55 = vmul.f32 %v3363_v41, %v4729_v13 }
 0x2c8   :  { %3374 = vrcp.f32 %v1598_v25 }
 0x2c9   :  { %v3365_v24 = vpop.eup %3364  ;;  %3088 = vmatprep.mubr.msk.f32.mxu0 %vm661_vm1, %v1743_v55 }
 0x2ca   :  { %v3367_v48 = vpop.eup %3366  ;;  %v2998_v51 = vpop.f32.mrb[92].mxu1  ;;  %3089 = vmatmul.mubr.msk.f32.gmra.mrb[84].mxu0 %vm661_vm1, %v1744_v32  ;;  %v1746_v16 = vmul.f32 %v3365_v24, %v4234_v20  ;;  %v4732_v20 = vld [vmem:[#allocation6_spill] sm:$0xff] }
 0x2cb   :  { %3376 = vrcp.f32 %v2998_v51  ;;  %v1608_v31 = vpop.f32.mrb[93].mxu1  ;;  %v1745_v45 = vmul.f32 %v3367_v48, %v4226_v3 }
 0x2cc   :  { %3378 = vrcp.f32 %v1608_v31 }
 0x2cd   :  { %v3369_v1 = vpop.eup %3368  ;;  %3091 = vmatprep.mubr.msk.f32.mxu0 %vm661_vm1, %v1745_v45 }
 0x2ce   :  { %v3371_v57 = vpop.eup %3370  ;;  %v3001_v5 = vpop.f32.mrb[94].mxu1  ;;  %3092 = vmatmul.mubr.msk.f32.gmra.mrb[86].mxu0 %vm661_vm1, %v1746_v16  ;;  %v1748_v26 = vmul.f32 %v3369_v1, %v4731_v22 }
 0x2cf   :  { %3380 = vrcp.f32 %v3001_v5  ;;  %v1618_v2 = vpop.f32.mrb[95].mxu1  ;;  %v1747_v61 = vmul.f32 %v3371_v57, %v4236_v6  ;;  %v4734_v6 = vld [vmem:[#allocation10_spill] sm:$0xff] }
 0x2d0   :  { %3382 = vrcp.f32 %v1618_v2 }
 0x2d1   :  { %v3373_v63 = vpop.eup %3372  ;;  %3094 = vmatprep.mubr.msk.f32.mxu0 %vm661_vm1, %v1747_v61 }
 0x2d2   :  { %v3375_v3 = vpop.eup %3374  ;;  %3095 = vmatmul.mubr.msk.f32.gmra.mrb[88].mxu0 %vm661_vm1, %v1748_v26  ;;  %v1750_v50 = vmul.f32 %v3373_v63, %v4733_v43 }
 0x2d3   :  { %v1749_v0 = vmul.f32 %v3375_v3, %v4732_v20 }
 0x2d5   :  { %v3377_v28 = vpop.eup %3376  ;;  %3097 = vmatprep.mubr.msk.f32.mxu0 %vm661_vm1, %v1749_v0 }
 0x2d6   :  { %v3379_v4 = vpop.eup %3378  ;;  %3098 = vmatmul.mubr.msk.f32.gmra.mrb[90].mxu0 %vm661_vm1, %v1750_v50  ;;  %v1752_v33 = vmul.f32 %v3377_v28, %v4735_v59 }
 0x2d7   :  { %v1751_v12 = vmul.f32 %v3379_v4, %v4734_v6 }
 0x2d9   :  { %v3381_v56 = vpop.eup %3380  ;;  %3100 = vmatprep.mubr.msk.f32.mxu0 %vm661_vm1, %v1751_v12 }
 0x2da   :  { %v3383_v34 = vpop.eup %3382  ;;  %3101 = vmatmul.mubr.msk.f32.gmra.mrb[92].mxu0 %vm661_vm1, %v1752_v33  ;;  %v1754_v9 = vmul.f32 %v3381_v56, %v4737_v30 }
 0x2db   :  { %v1753_v11 = vmul.f32 %v3383_v34, %v4736_v15 }
 0x2dd   :  { %3103 = vmatprep.mubr.msk.f32.mxu0 %vm661_vm1, %v1753_v11 }
 0x2de   :  { %3104 = vmatmul.mubr.msk.f32.gmra.mrb[94].mxu0 %vm661_vm1, %v1754_v9 }
 0x335   :  { %v3012_v27 = vpop.f32.mrb[32].mxu0 }
 0x336   :  { %2337 = vst.msk [vmem:[%s4659_s4 + $0x8] sm:$0xff] %vm661_vm1, %v3012_v27  ;;  %v2017_v40 = vpop.f32.mrb[33].mxu0 }
 0x337   :  { %2336 = vst.msk [vmem:[%s4659_s4] sm:$0xff] %vm661_vm1, %v2017_v40 }
 0x339   :  { %v3015_v7 = vpop.f32.mrb[34].mxu0 }
 0x33a   :  { %2339 = vst.msk [vmem:[%s4659_s4 + $0x18] sm:$0xff] %vm661_vm1, %v3015_v7  ;;  %v2027_v62 = vpop.f32.mrb[35].mxu0 }
 0x33b   :  { %2338 = vst.msk [vmem:[%s4659_s4 + $0x10] sm:$0xff] %vm661_vm1, %v2027_v62 }
 0x33d   :  { %v3018_v21 = vpop.f32.mrb[36].mxu0 }
 0x33e   :  { %2341 = vst.msk [vmem:[%s4659_s4 + $0x28] sm:$0xff] %vm661_vm1, %v3018_v21  ;;  %v2037_v23 = vpop.f32.mrb[37].mxu0 }
 0x33f   :  { %2340 = vst.msk [vmem:[%s4659_s4 + $0x20] sm:$0xff] %vm661_vm1, %v2037_v23 }
 0x341   :  { %v3021_v10 = vpop.f32.mrb[38].mxu0 }
 0x342   :  { %2343 = vst.msk [vmem:[%s4659_s4 + $0x38] sm:$0xff] %vm661_vm1, %v3021_v10  ;;  %v2047_v46 = vpop.f32.mrb[39].mxu0 }
 0x343   :  { %2342 = vst.msk [vmem:[%s4659_s4 + $0x30] sm:$0xff] %vm661_vm1, %v2047_v46 }
 0x345   :  { %v3024_v18 = vpop.f32.mrb[40].mxu0 }
 0x346   :  { %2345 = vst.msk [vmem:[%s4659_s4 + $0x48] sm:$0xff] %vm661_vm1, %v3024_v18  ;;  %v2057_v19 = vpop.f32.mrb[41].mxu0 }
 0x347   :  { %2344 = vst.msk [vmem:[%s4659_s4 + $0x40] sm:$0xff] %vm661_vm1, %v2057_v19 }
 0x349   :  { %v3027_v14 = vpop.f32.mrb[42].mxu0 }
 0x34a   :  { %2347 = vst.msk [vmem:[%s4659_s4 + $0x58] sm:$0xff] %vm661_vm1, %v3027_v14  ;;  %v2067_v29 = vpop.f32.mrb[43].mxu0 }
 0x34b   :  { %2346 = vst.msk [vmem:[%s4659_s4 + $0x50] sm:$0xff] %vm661_vm1, %v2067_v29 }
 0x34d   :  { %v3030_v36 = vpop.f32.mrb[44].mxu0 }
 0x34e   :  { %2349 = vst.msk [vmem:[%s4659_s4 + $0x68] sm:$0xff] %vm661_vm1, %v3030_v36  ;;  %v2077_v52 = vpop.f32.mrb[45].mxu0 }
 0x34f   :  { %2348 = vst.msk [vmem:[%s4659_s4 + $0x60] sm:$0xff] %vm661_vm1, %v2077_v52 }
 0x351   :  { %v3033_v38 = vpop.f32.mrb[46].mxu0 }
 0x352   :  { %2351 = vst.msk [vmem:[%s4659_s4 + $0x78] sm:$0xff] %vm661_vm1, %v3033_v38  ;;  %v2087_v37 = vpop.f32.mrb[47].mxu0 }
 0x353   :  { %2350 = vst.msk [vmem:[%s4659_s4 + $0x70] sm:$0xff] %vm661_vm1, %v2087_v37 }
 0x355   :  { %v3036_v44 = vpop.f32.mrb[48].mxu0 }
 0x356   :  { %2353 = vst.msk [vmem:[%s4659_s4 + $0x88] sm:$0xff] %vm661_vm1, %v3036_v44  ;;  %v2097_v54 = vpop.f32.mrb[49].mxu0 }
 0x357   :  { %2352 = vst.msk [vmem:[%s4659_s4 + $0x80] sm:$0xff] %vm661_vm1, %v2097_v54 }
 0x359   :  { %v3039_v35 = vpop.f32.mrb[50].mxu0 }
 0x35a   :  { %2355 = vst.msk [vmem:[%s4659_s4 + $0x98] sm:$0xff] %vm661_vm1, %v3039_v35  ;;  %v2107_v39 = vpop.f32.mrb[51].mxu0 }
 0x35b   :  { %2354 = vst.msk [vmem:[%s4659_s4 + $0x90] sm:$0xff] %vm661_vm1, %v2107_v39 }
 0x35d   :  { %v3042_v58 = vpop.f32.mrb[52].mxu0 }
 0x35e   :  { %2357 = vst.msk [vmem:[%s4659_s4 + $0xa8] sm:$0xff] %vm661_vm1, %v3042_v58  ;;  %v2117_v17 = vpop.f32.mrb[53].mxu0 }
 0x35f   :  { %2356 = vst.msk [vmem:[%s4659_s4 + $0xa0] sm:$0xff] %vm661_vm1, %v2117_v17 }
 0x361   :  { %v3045_v47 = vpop.f32.mrb[54].mxu0 }
 0x362   :  { %2359 = vst.msk [vmem:[%s4659_s4 + $0xb8] sm:$0xff] %vm661_vm1, %v3045_v47  ;;  %v2127_v60 = vpop.f32.mrb[55].mxu0 }
 0x363   :  { %2358 = vst.msk [vmem:[%s4659_s4 + $0xb0] sm:$0xff] %vm661_vm1, %v2127_v60 }
 0x365   :  { %v3048_v42 = vpop.f32.mrb[56].mxu0 }
 0x366   :  { %2361 = vst.msk [vmem:[%s4659_s4 + $0xc8] sm:$0xff] %vm661_vm1, %v3048_v42  ;;  %v2137_v49 = vpop.f32.mrb[57].mxu0 }
 0x367   :  { %2360 = vst.msk [vmem:[%s4659_s4 + $0xc0] sm:$0xff] %vm661_vm1, %v2137_v49 }
 0x369   :  { %v3051_v41 = vpop.f32.mrb[58].mxu0 }
 0x36a   :  { %2363 = vst.msk [vmem:[%s4659_s4 + $0xd8] sm:$0xff] %vm661_vm1, %v3051_v41  ;;  %v2147_v53 = vpop.f32.mrb[59].mxu0 }
 0x36b   :  { %2362 = vst.msk [vmem:[%s4659_s4 + $0xd0] sm:$0xff] %vm661_vm1, %v2147_v53 }
 0x36d   :  { %v3054_v25 = vpop.f32.mrb[60].mxu0 }
 0x36e   :  { %2365 = vst.msk [vmem:[%s4659_s4 + $0xe8] sm:$0xff] %vm661_vm1, %v3054_v25  ;;  %v2157_v13 = vpop.f32.mrb[61].mxu0 }
 0x36f   :  { %2364 = vst.msk [vmem:[%s4659_s4 + $0xe0] sm:$0xff] %vm661_vm1, %v2157_v13 }
 0x371   :  { %v3057_v55 = vpop.f32.mrb[62].mxu0 }
 0x372   :  { %2367 = vst.msk [vmem:[%s4659_s4 + $0xf8] sm:$0xff] %vm661_vm1, %v3057_v55  ;;  %v2167_v8 = vpop.f32.mrb[63].mxu0 }
 0x373   :  { %2366 = vst.msk [vmem:[%s4659_s4 + $0xf0] sm:$0xff] %vm661_vm1, %v2167_v8 }
 0x375   :  { %v3060_v32 = vpop.f32.mrb[64].mxu0 }
 0x376   :  { %2369 = vst.msk [vmem:[%s4659_s4 + $0x108] sm:$0xff] %vm661_vm1, %v3060_v32  ;;  %v2177_v24 = vpop.f32.mrb[65].mxu0 }
 0x377   :  { %2368 = vst.msk [vmem:[%s4659_s4 + $0x100] sm:$0xff] %vm661_vm1, %v2177_v24 }
 0x379   :  { %v3063_v48 = vpop.f32.mrb[66].mxu0 }
 0x37a   :  { %2371 = vst.msk [vmem:[%s4659_s4 + $0x118] sm:$0xff] %vm661_vm1, %v3063_v48  ;;  %v2187_v51 = vpop.f32.mrb[67].mxu0 }
 0x37b   :  { %2370 = vst.msk [vmem:[%s4659_s4 + $0x110] sm:$0xff] %vm661_vm1, %v2187_v51 }
 0x37d   :  { %v3066_v31 = vpop.f32.mrb[68].mxu0 }
 0x37e   :  { %2373 = vst.msk [vmem:[%s4659_s4 + $0x128] sm:$0xff] %vm661_vm1, %v3066_v31  ;;  %v2197_v45 = vpop.f32.mrb[69].mxu0 }
 0x37f   :  { %2372 = vst.msk [vmem:[%s4659_s4 + $0x120] sm:$0xff] %vm661_vm1, %v2197_v45 }
 0x381   :  { %v3069_v16 = vpop.f32.mrb[70].mxu0 }
 0x382   :  { %2375 = vst.msk [vmem:[%s4659_s4 + $0x138] sm:$0xff] %vm661_vm1, %v3069_v16  ;;  %v2207_v1 = vpop.f32.mrb[71].mxu0 }
 0x383   :  { %2374 = vst.msk [vmem:[%s4659_s4 + $0x130] sm:$0xff] %vm661_vm1, %v2207_v1 }
 0x385   :  { %v3072_v57 = vpop.f32.mrb[72].mxu0 }
 0x386   :  { %2377 = vst.msk [vmem:[%s4659_s4 + $0x148] sm:$0xff] %vm661_vm1, %v3072_v57  ;;  %v2217_v5 = vpop.f32.mrb[73].mxu0 }
 0x387   :  { %2376 = vst.msk [vmem:[%s4659_s4 + $0x140] sm:$0xff] %vm661_vm1, %v2217_v5 }
 0x389   :  { %v3075_v2 = vpop.f32.mrb[74].mxu0 }
 0x38a   :  { %2379 = vst.msk [vmem:[%s4659_s4 + $0x158] sm:$0xff] %vm661_vm1, %v3075_v2  ;;  %v2227_v61 = vpop.f32.mrb[75].mxu0 }
 0x38b   :  { %2378 = vst.msk [vmem:[%s4659_s4 + $0x150] sm:$0xff] %vm661_vm1, %v2227_v61 }
 0x38d   :  { %v3078_v22 = vpop.f32.mrb[76].mxu0 }
 0x38e   :  { %2381 = vst.msk [vmem:[%s4659_s4 + $0x168] sm:$0xff] %vm661_vm1, %v3078_v22  ;;  %v2237_v26 = vpop.f32.mrb[77].mxu0 }
 0x38f   :  { %2380 = vst.msk [vmem:[%s4659_s4 + $0x160] sm:$0xff] %vm661_vm1, %v2237_v26 }
 0x391   :  { %v3081_v63 = vpop.f32.mrb[78].mxu0 }
 0x392   :  { %2383 = vst.msk [vmem:[%s4659_s4 + $0x178] sm:$0xff] %vm661_vm1, %v3081_v63  ;;  %v2247_v3 = vpop.f32.mrb[79].mxu0 }
 0x393   :  { %2382 = vst.msk [vmem:[%s4659_s4 + $0x170] sm:$0xff] %vm661_vm1, %v2247_v3 }
 0x395   :  { %v3084_v20 = vpop.f32.mrb[80].mxu0 }
 0x396   :  { %2385 = vst.msk [vmem:[%s4659_s4 + $0x188] sm:$0xff] %vm661_vm1, %v3084_v20  ;;  %v2257_v0 = vpop.f32.mrb[81].mxu0 }
 0x397   :  { %2384 = vst.msk [vmem:[%s4659_s4 + $0x180] sm:$0xff] %vm661_vm1, %v2257_v0 }
 0x399   :  { %v3087_v43 = vpop.f32.mrb[82].mxu0 }
 0x39a   :  { %2387 = vst.msk [vmem:[%s4659_s4 + $0x198] sm:$0xff] %vm661_vm1, %v3087_v43  ;;  %v2267_v50 = vpop.f32.mrb[83].mxu0 }
 0x39b   :  { %2386 = vst.msk [vmem:[%s4659_s4 + $0x190] sm:$0xff] %vm661_vm1, %v2267_v50 }
 0x39d   :  { %v3090_v28 = vpop.f32.mrb[84].mxu0 }
 0x39e   :  { %2389 = vst.msk [vmem:[%s4659_s4 + $0x1a8] sm:$0xff] %vm661_vm1, %v3090_v28  ;;  %v2277_v4 = vpop.f32.mrb[85].mxu0 }
 0x39f   :  { %2388 = vst.msk [vmem:[%s4659_s4 + $0x1a0] sm:$0xff] %vm661_vm1, %v2277_v4 }
 0x3a1   :  { %v3093_v6 = vpop.f32.mrb[86].mxu0 }
 0x3a2   :  { %2391 = vst.msk [vmem:[%s4659_s4 + $0x1b8] sm:$0xff] %vm661_vm1, %v3093_v6  ;;  %v2287_v12 = vpop.f32.mrb[87].mxu0 }
 0x3a3   :  { %2390 = vst.msk [vmem:[%s4659_s4 + $0x1b0] sm:$0xff] %vm661_vm1, %v2287_v12 }
 0x3a5   :  { %v3096_v59 = vpop.f32.mrb[88].mxu0 }
 0x3a6   :  { %2393 = vst.msk [vmem:[%s4659_s4 + $0x1c8] sm:$0xff] %vm661_vm1, %v3096_v59  ;;  %v2297_v33 = vpop.f32.mrb[89].mxu0 }
 0x3a7   :  { %2392 = vst.msk [vmem:[%s4659_s4 + $0x1c0] sm:$0xff] %vm661_vm1, %v2297_v33 }
 0x3a9   :  { %v3099_v56 = vpop.f32.mrb[90].mxu0 }
 0x3aa   :  { %2395 = vst.msk [vmem:[%s4659_s4 + $0x1d8] sm:$0xff] %vm661_vm1, %v3099_v56  ;;  %v2307_v34 = vpop.f32.mrb[91].mxu0 }
 0x3ab   :  { %2394 = vst.msk [vmem:[%s4659_s4 + $0x1d0] sm:$0xff] %vm661_vm1, %v2307_v34 }
 0x3ad   :  { %v3102_v15 = vpop.f32.mrb[92].mxu0 }
 0x3ae   :  { %2397 = vst.msk [vmem:[%s4659_s4 + $0x1e8] sm:$0xff] %vm661_vm1, %v3102_v15  ;;  %v2317_v11 = vpop.f32.mrb[93].mxu0 }
 0x3af   :  { %2396 = vst.msk [vmem:[%s4659_s4 + $0x1e0] sm:$0xff] %vm661_vm1, %v2317_v11 }
 0x3b1   :  { %v3105_v30 = vpop.f32.mrb[94].mxu0 }
 0x3b2   :  { %2399 = vst.msk [vmem:[%s4659_s4 + $0x1f8] sm:$0xff] %vm661_vm1, %v3105_v30  ;;  %v2327_v9 = vpop.f32.mrb[95].mxu0 }
 0x3b3   :  { %2398 = vst.msk [vmem:[%s4659_s4 + $0x1f0] sm:$0xff] %vm661_vm1, %v2327_v9 }

</bundles_post_ra>
